<compile_context>
chip_gen: v6e
topology: v6e:2x2x1
jax: 0.10.0
libtpu: 0.0.40
codegen_flags: <defaults>
</compile_context>

<pallas_src>
import functools

import jax
import jax.numpy as jnp
from jax.experimental import pallas as pl
from jax.experimental.pallas import tpu as pltpu


def _round_up(v: int, m: int) -> int:
    return (v + m - 1) // m * m


# ---------------------------------------------------------------------------
# Kernel
# ---------------------------------------------------------------------------
def _multi_ldl_kernel(n_heads, h1, h1p, s, precision,
                      x_ref,                       # (Bp, Finp)         compute dtype
                      w1_ref,                      # (Finp, NH*H1p)     compute dtype
                      b1_ref, g1_ref, be1_ref,     # (1, NH*H1p)        f32
                      w2_ref,                      # (NH*H1p, H2p)      compute dtype (mix-scaled)
                      b2_ref,                      # (1, H2p)           f32 (mix-summed)
                      wh_ref,                      # (H2p, Sp)          compute dtype
                      gh_ref, bh_ref,              # (1, Sp)            f32
                      out_ref):                    # (Bp, Sp)           f32
    eps = 1e-5
    compute_dtype = x_ref.dtype

    # ---- neck stage 1: ONE MXU matmul covering all heads ----------------------
    h = jnp.dot(x_ref[...], w1_ref[...],
                preferred_element_type=jnp.float32, precision=precision)
    h = h + b1_ref[...]                                  # padded lanes stay exactly 0

    # ---- per-head LayerNorm on static 128-aligned lane-block slices -----------
    lane = jax.lax.broadcasted_iota(jnp.int32, (1, h1p), 1)
    fmask = lane < h1                                    # real features of each head
    cols = []
    for i in range(n_heads):                             # static, small trip count
        hi = h[:, i * h1p:(i + 1) * h1p]                 # (B, h1p) aligned slice
        mu = jnp.sum(hi, axis=-1, keepdims=True) * (1.0 / h1)        # pads are 0
        c = hi - mu
        var = jnp.sum(jnp.where(fmask, c * c, 0.0), axis=-1,
                      keepdims=True) * (1.0 / h1)
        cols.append(c * jax.lax.rsqrt(var + eps))
    hn = cols[0] if n_heads == 1 else jnp.concatenate(cols, axis=-1)
    # affine (gamma/beta zero-padded -> padded lanes become 0) + ReLU
    # (Dropout p=0.02 is identity in eval mode)
    hn = jnp.maximum(hn * g1_ref[...] + be1_ref[...], 0.0)

    # ---- neck stage 2 + label_mix (mix row pre-folded into W2 / bias) ---------
    mix = jnp.dot(hn.astype(compute_dtype), w2_ref[...],
                  preferred_element_type=jnp.float32,
                  precision=precision) + b2_ref[...]                  # (B, H2p)

    # ---- ldl[idx]: Linear(no bias) -> LayerNorm -> masked softmax -------------
    y = jnp.dot(mix.astype(compute_dtype), wh_ref[...],
                preferred_element_type=jnp.float32, precision=precision)  # (B, Sp)
    lane_s = jax.lax.broadcasted_iota(jnp.int32, (1, y.shape[-1]), 1)
    smask = lane_s < s
    mu_y = jnp.sum(y, axis=-1, keepdims=True) * (1.0 / s)             # pads are 0
    cy = y - mu_y
    var_y = jnp.sum(jnp.where(smask, cy * cy, 0.0), axis=-1,
                    keepdims=True) * (1.0 / s)
    y = cy * jax.lax.rsqrt(var_y + eps) * gh_ref[...] + bh_ref[...]
    y = jnp.where(smask, y, -1e30)                       # exclude padded lanes
    y = y - jnp.max(y, axis=-1, keepdims=True)
    e = jnp.exp(y)
    out_ref[...] = (e / jnp.sum(e, axis=-1, keepdims=True)).astype(out_ref.dtype)


# ---------------------------------------------------------------------------
# Host-side weight packing (free layout plumbing)
# ---------------------------------------------------------------------------
def _prepare_packed(params, idx, compute_dtype):
    w1, b1, g1, be1 = params["w1"], params["b1"], params["g1"], params["be1"]
    w2, b2 = params["w2"], params["b2"]
    wh, gh, bh = params["wh"][idx], params["gh"][idx], params["bh"][idx]
    mix = params["label_mix"][idx, :, 0].astype(jnp.float32)           # (n_heads,)

    n_heads, h1, fin = w1.shape
    h2 = w2.shape[1]
    s = wh.shape[0]
    finp, h1p, h2p, sp = (_round_up(fin, 128), _round_up(h1, 128),
                          _round_up(h2, 128), _round_up(s, 128))

    # W1: (NH, H1, Fin) -> pre-transposed, padded, head-major concat (Finp, NH*H1p)
    w1t = jnp.transpose(w1, (0, 2, 1))                                  # (NH, Fin, H1)
    w1t = jnp.pad(w1t, ((0, 0), (0, finp - fin), (0, h1p - h1)))
    w1cat = jnp.transpose(w1t, (1, 0, 2)).reshape(finp, n_heads * h1p)

    def pad_row(v, width, pw):                 # (NH, 1, width) -> (1, NH*pw), zero padded
        v = jnp.pad(v[:, 0, :], ((0, 0), (0, pw - width)))
        return v.reshape(1, n_heads * pw)

    b1cat, g1cat, be1cat = (pad_row(b1, h1, h1p), pad_row(g1, h1, h1p),
                            pad_row(be1, h1, h1p))

    # W2 scaled by the selected label_mix row: (NH, H2, H1) -> (NH*H1p, H2p)
    w2t = jnp.transpose(w2, (0, 2, 1)) * mix[:, None, None]             # (NH, H1, H2)
    w2t = jnp.pad(w2t, ((0, 0), (0, h1p - h1), (0, h2p - h2)))
    w2cat = w2t.reshape(n_heads * h1p, h2p)
    b2mix = jnp.sum(b2[:, 0, :] * mix[:, None], axis=0)                 # (H2,)
    b2mix = jnp.pad(b2mix, (0, h2p - h2)).reshape(1, h2p)

    whp = jnp.pad(wh.T, ((0, h2p - h2), (0, sp - s)))                   # (H2p, Sp)
    ghp = jnp.pad(gh[0], (0, sp - s)).reshape(1, sp)
    bhp = jnp.pad(bh[0], (0, sp - s)).reshape(1, sp)

    packed = (w1cat.astype(compute_dtype),
              b1cat.astype(jnp.float32), g1cat.astype(jnp.float32),
              be1cat.astype(jnp.float32),
              w2cat.astype(compute_dtype), b2mix.astype(jnp.float32),
              whp.astype(compute_dtype), ghp.astype(jnp.float32),
              bhp.astype(jnp.float32))
    dims = dict(n_heads=n_heads, h1=h1, h1p=h1p, s=s, sp=sp, finp=finp)
    return packed, dims


def multi_ldl_forward(x, params, idx, compute_dtype=jnp.float32):
    """Pallas forward for MultiLDLHead(x, idx) with individual MLP necks (eval mode).

    `idx` must be a static Python int (per-idx head shapes are ragged)."""
    packed, d = _prepare_packed(params, idx, compute_dtype)
    B, fin = x.shape
    Bp = _round_up(max(B, 8), 8)
    xp = jnp.pad(x, ((0, Bp - B), (0, d["finp"] - fin))).astype(compute_dtype)

    is_f32 = jnp.dtype(compute_dtype) == jnp.dtype(jnp.float32)
    precision = jax.lax.Precision.HIGHEST if is_f32 else None

    kernel = functools.partial(_multi_ldl_kernel,
                               d["n_heads"], d["h1"], d["h1p"], d["s"], precision)
    vmem = pl.BlockSpec(memory_space=pltpu.MemorySpace.VMEM)

    out = pl.pallas_call(
        kernel,
        out_shape=jax.ShapeDtypeStruct((Bp, d["sp"]), jnp.float32),
        in_specs=[vmem] * 10,
        out_specs=vmem,
    )(xp, *packed)
    return out[:B, :d["s"]]


# ---------------------------------------------------------------------------
# Plain-JAX reference (mirrors the PyTorch forward in eval mode)
# ---------------------------------------------------------------------------
def ref_forward(x, params, idx):
    P = jax.lax.Precision.HIGHEST
    n_heads = params["w1"].shape[0]
    outs = []
    for i in range(n_heads):
        h = jnp.dot(x, params["w1"][i].T, precision=P) + params["b1"][i][0]
        mu = h.mean(-1, keepdims=True)
        var = ((h - mu) ** 2).mean(-1, keepdims=True)
        h = (h - mu) / jnp.sqrt(var + 1e-5) * params["g1"][i][0] + params["be1"][i][0]
        h = jnp.maximum(h, 0.0)
        outs.append(jnp.dot(h, params["w2"][i].T, precision=P) + params["b2"][i][0])
    stacked = jnp.stack(outs, axis=1)                                   # (B, NH, H2)
    mixed = jnp.einsum("oc,bcf->bof", params["label_mix"][:, :, 0], stacked,
                       precision=P)[:, idx, :]
    y = jnp.dot(mixed, params["wh"][idx].T, precision=P)
    mu = y.mean(-1, keepdims=True)
    var = ((y - mu) ** 2).mean(-1, keepdims=True)
    y = (y - mu) / jnp.sqrt(var + 1e-5) * params["gh"][idx][0] + params["bh"][idx][0]
    return jax.nn.softmax(y, axis=-1)


def init_params(key, in_features, layer_sizes, quantization_steps):
    """Deterministic synthetic params matching MultiLDLHead.__init__ shapes."""
    n_heads = len(quantization_steps)
    h1, h2 = layer_sizes
    k = jax.random.split(key, 8)
    return {
        "w1": jax.random.normal(k[0], (n_heads, h1, in_features), jnp.float32) * 0.1,
        "b1": jax.random.normal(k[1], (n_heads, 1, h1), jnp.float32) * 0.05,
        "g1": jnp.ones((n_heads, 1, h1), jnp.float32),
        "be1": jnp.zeros((n_heads, 1, h1), jnp.float32),
        "w2": jax.random.normal(k[2], (n_heads, h2, h1), jnp.float32) * 0.1,
        "b2": jax.random.normal(k[3], (n_heads, 1, h2), jnp.float32) * 0.05,
        # label_mix init is eye in the module but learnable; perturb so the test
        # actually exercises cross-head mixing.
        "label_mix": (jnp.eye(n_heads, dtype=jnp.float32)
                      + 0.05 * jax.random.normal(k[5], (n_heads, n_heads),
                                                 jnp.float32))[:, :, None],
        "wh": [jax.random.normal(jax.random.fold_in(k[4], i), (s, h2), jnp.float32) * 0.1
               for i, s in enumerate(quantization_steps)],
        "gh": [jnp.ones((1, s), jnp.float32) for s in quantization_steps],
        "bh": [jnp.zeros((1, s), jnp.float32) for s in quantization_steps],
    }


if __name__ == "__main__":
    B, IN_FEATURES = 4, 32
    LAYER_SIZES = [32, 32]
    QUANT_STEPS = [16, 16]
    IDX = 1

    key = jax.random.PRNGKey(0)
    kx, kp = jax.random.split(key)
    x = jax.random.normal(kx, (B, IN_FEATURES), jnp.float32)
    params = init_params(kp, IN_FEATURES, LAYER_SIZES, QUANT_STEPS)

    ref = ref_forward(x, params, IDX)

    # f32 path: tight check vs the plain-JAX reference (both use HIGHEST matmul precision).
    out = jax.block_until_ready(multi_ldl_forward(x, params, IDX))
    assert out.shape == (B, QUANT_STEPS[IDX])
    assert jnp.allclose(out, ref, atol=2e-4, rtol=2e-4), "f32 mismatch vs JAX reference"
    assert jnp.allclose(out.sum(-1), 1.0, atol=1e-4), "softmax rows must sum to 1"

    # bf16 matmul operands (f32 accumulation / LayerNorm / softmax): loose check.
    out_bf16 = jax.block_until_ready(
        multi_ldl_forward(x, params, IDX, compute_dtype=jnp.bfloat16))
    assert out_bf16.shape == (B, QUANT_STEPS[IDX])
    assert jnp.allclose(out_bf16, ref, atol=5e-2, rtol=5e-2), "bf16 mismatch vs JAX reference"
    assert jnp.allclose(out_bf16.sum(-1), 1.0, atol=1e-4), "softmax rows must sum to 1 (bf16)"

    # TODO(synk): training-mode Dropout(p=0.02) / no_grad head freezing are autograd-time
    # behaviors and are intentionally not modeled in this inference kernel.
    print("KERNEL_OK")
</pallas_src>

<mosaic_0001>
module attributes {stable_mosaic.version = 11 : i64} {
  func.func @_multi_ldl_kernel(%arg0: memref<8x128xf32, #tpu.memory_space<vmem>>, %arg1: memref<128x256xf32, #tpu.memory_space<vmem>>, %arg2: memref<1x256xf32, #tpu.memory_space<vmem>>, %arg3: memref<1x256xf32, #tpu.memory_space<vmem>>, %arg4: memref<1x256xf32, #tpu.memory_space<vmem>>, %arg5: memref<256x128xf32, #tpu.memory_space<vmem>>, %arg6: memref<1x128xf32, #tpu.memory_space<vmem>>, %arg7: memref<128x128xf32, #tpu.memory_space<vmem>>, %arg8: memref<1x128xf32, #tpu.memory_space<vmem>>, %arg9: memref<1x128xf32, #tpu.memory_space<vmem>>, %arg10: memref<8x128xf32, #tpu.memory_space<vmem>>) attributes {dimension_semantics = [], scalar_prefetch = 0 : i64, scratch_operands = 0 : i64, tpu.core_type = #tpu.core_type<tc>} {
    %c0 = arith.constant 0 : index
    %c0_0 = arith.constant 0 : index
    %0 = vector.load %arg0[%c0, %c0_0] : memref<8x128xf32, #tpu.memory_space<vmem>>, vector<8x128xf32>
    %c0_1 = arith.constant 0 : index
    %c0_2 = arith.constant 0 : index
    %1 = vector.load %arg1[%c0_1, %c0_2] : memref<128x256xf32, #tpu.memory_space<vmem>>, vector<128x256xf32>
    %cst = arith.constant dense<0.000000e+00> : vector<8x256xf32>
    %2 = tpu.matmul %0, %1, %cst {dimension_numbers = #tpu.dot_dimension_numbers<[1], [0], [0], [1], [0, 0, 1, 1], [], []>, precision = #tpu.contract_precision<fp32>} : vector<8x128xf32>, vector<128x256xf32>, vector<8x256xf32> -> vector<8x256xf32>
    %c0_3 = arith.constant 0 : index
    %c0_4 = arith.constant 0 : index
    %3 = vector.load %arg2[%c0_3, %c0_4] : memref<1x256xf32, #tpu.memory_space<vmem>>, vector<1x256xf32>
    %4 = vector.broadcast %3 : vector<1x256xf32> to vector<8x256xf32>
    %5 = arith.addf %2, %4 : vector<8x256xf32>
    %6 = tpu.iota {dimensions = array<i32: 1>} : vector<1x128xi32>
    %c32_i32 = arith.constant 32 : i32
    %7 = vector.broadcast %c32_i32 : i32 to vector<1x128xi32>
    %8 = arith.cmpi slt, %6, %7 : vector<1x128xi32>
    %9 = vector.extract_strided_slice %5 {offsets = [0, 0], sizes = [8, 128], strides = [1, 1]} : vector<8x256xf32> to vector<8x128xf32>
    %cst_5 = arith.constant dense<0.000000e+00> : vector<8xf32>
    %10 = vector.multi_reduction <add>, %9, %cst_5 [1] : vector<8x128xf32> to vector<8xf32>
    %11 = vector.shape_cast %10 : vector<8xf32> to vector<8x1xf32>
    %cst_6 = arith.constant 3.125000e-02 : f32
    %12 = vector.broadcast %cst_6 : f32 to vector<8x1xf32>
    %13 = arith.mulf %11, %12 : vector<8x1xf32>
    %14 = vector.broadcast %13 : vector<8x1xf32> to vector<8x128xf32>
    %15 = arith.subf %9, %14 : vector<8x128xf32>
    %16 = arith.mulf %15, %15 : vector<8x128xf32>
    %cst_7 = arith.constant 0.000000e+00 : f32
    %17 = vector.shape_cast %8 : vector<1x128xi1> to vector<1x128xi1>
    %18 = vector.broadcast %17 : vector<1x128xi1> to vector<8x128xi1>
    %19 = vector.broadcast %cst_7 : f32 to vector<8x128xf32>
    %20 = arith.select %18, %16, %19 : vector<8x128xi1>, vector<8x128xf32>
    %cst_8 = arith.constant dense<0.000000e+00> : vector<8xf32>
    %21 = vector.multi_reduction <add>, %20, %cst_8 [1] : vector<8x128xf32> to vector<8xf32>
    %22 = vector.shape_cast %21 : vector<8xf32> to vector<8x1xf32>
    %cst_9 = arith.constant 3.125000e-02 : f32
    %23 = vector.broadcast %cst_9 : f32 to vector<8x1xf32>
    %24 = arith.mulf %22, %23 : vector<8x1xf32>
    %cst_10 = arith.constant 9.99999974E-6 : f32
    %25 = vector.broadcast %cst_10 : f32 to vector<8x1xf32>
    %26 = arith.addf %24, %25 : vector<8x1xf32>
    %27 = math.rsqrt %26 : vector<8x1xf32>
    %28 = vector.broadcast %27 : vector<8x1xf32> to vector<8x128xf32>
    %29 = arith.mulf %15, %28 : vector<8x128xf32>
    %30 = vector.extract_strided_slice %5 {offsets = [0, 128], sizes = [8, 128], strides = [1, 1]} : vector<8x256xf32> to vector<8x128xf32>
    %cst_11 = arith.constant dense<0.000000e+00> : vector<8xf32>
    %31 = vector.multi_reduction <add>, %30, %cst_11 [1] : vector<8x128xf32> to vector<8xf32>
    %32 = vector.shape_cast %31 : vector<8xf32> to vector<8x1xf32>
    %cst_12 = arith.constant 3.125000e-02 : f32
    %33 = vector.broadcast %cst_12 : f32 to vector<8x1xf32>
    %34 = arith.mulf %32, %33 : vector<8x1xf32>
    %35 = vector.broadcast %34 : vector<8x1xf32> to vector<8x128xf32>
    %36 = arith.subf %30, %35 : vector<8x128xf32>
    %37 = arith.mulf %36, %36 : vector<8x128xf32>
    %cst_13 = arith.constant 0.000000e+00 : f32
    %38 = vector.shape_cast %8 : vector<1x128xi1> to vector<1x128xi1>
    %39 = vector.broadcast %38 : vector<1x128xi1> to vector<8x128xi1>
    %40 = vector.broadcast %cst_13 : f32 to vector<8x128xf32>
    %41 = arith.select %39, %37, %40 : vector<8x128xi1>, vector<8x128xf32>
    %cst_14 = arith.constant dense<0.000000e+00> : vector<8xf32>
    %42 = vector.multi_reduction <add>, %41, %cst_14 [1] : vector<8x128xf32> to vector<8xf32>
    %43 = vector.shape_cast %42 : vector<8xf32> to vector<8x1xf32>
    %cst_15 = arith.constant 3.125000e-02 : f32
    %44 = vector.broadcast %cst_15 : f32 to vector<8x1xf32>
    %45 = arith.mulf %43, %44 : vector<8x1xf32>
    %cst_16 = arith.constant 9.99999974E-6 : f32
    %46 = vector.broadcast %cst_16 : f32 to vector<8x1xf32>
    %47 = arith.addf %45, %46 : vector<8x1xf32>
    %48 = math.rsqrt %47 : vector<8x1xf32>
    %49 = vector.broadcast %48 : vector<8x1xf32> to vector<8x128xf32>
    %50 = arith.mulf %36, %49 : vector<8x128xf32>
    %51 = tpu.concatenate %29, %50 in 1 : vector<8x128xf32>, vector<8x128xf32> -> vector<8x256xf32>
    %c0_17 = arith.constant 0 : index
    %c0_18 = arith.constant 0 : index
    %52 = vector.load %arg3[%c0_17, %c0_18] : memref<1x256xf32, #tpu.memory_space<vmem>>, vector<1x256xf32>
    %53 = vector.broadcast %52 : vector<1x256xf32> to vector<8x256xf32>
    %54 = arith.mulf %51, %53 : vector<8x256xf32>
    %c0_19 = arith.constant 0 : index
    %c0_20 = arith.constant 0 : index
    %55 = vector.load %arg4[%c0_19, %c0_20] : memref<1x256xf32, #tpu.memory_space<vmem>>, vector<1x256xf32>
    %56 = vector.broadcast %55 : vector<1x256xf32> to vector<8x256xf32>
    %57 = arith.addf %54, %56 : vector<8x256xf32>
    %cst_21 = arith.constant 0.000000e+00 : f32
    %58 = vector.broadcast %cst_21 : f32 to vector<8x256xf32>
    %59 = arith.maximumf %57, %58 : vector<8x256xf32>
    %c0_22 = arith.constant 0 : index
    %c0_23 = arith.constant 0 : index
    %60 = vector.load %arg5[%c0_22, %c0_23] : memref<256x128xf32, #tpu.memory_space<vmem>>, vector<256x128xf32>
    %cst_24 = arith.constant dense<0.000000e+00> : vector<8x128xf32>
    %61 = tpu.matmul %59, %60, %cst_24 {dimension_numbers = #tpu.dot_dimension_numbers<[1], [0], [0], [1], [0, 0, 1, 1], [], []>, precision = #tpu.contract_precision<fp32>} : vector<8x256xf32>, vector<256x128xf32>, vector<8x128xf32> -> vector<8x128xf32>
    %c0_25 = arith.constant 0 : index
    %c0_26 = arith.constant 0 : index
    %62 = vector.load %arg6[%c0_25, %c0_26] : memref<1x128xf32, #tpu.memory_space<vmem>>, vector<1x128xf32>
    %63 = vector.broadcast %62 : vector<1x128xf32> to vector<8x128xf32>
    %64 = arith.addf %61, %63 : vector<8x128xf32>
    %c0_27 = arith.constant 0 : index
    %c0_28 = arith.constant 0 : index
    %65 = vector.load %arg7[%c0_27, %c0_28] : memref<128x128xf32, #tpu.memory_space<vmem>>, vector<128x128xf32>
    %cst_29 = arith.constant dense<0.000000e+00> : vector<8x128xf32>
    %66 = tpu.matmul %64, %65, %cst_29 {dimension_numbers = #tpu.dot_dimension_numbers<[1], [0], [0], [1], [0, 0, 1, 1], [], []>, precision = #tpu.contract_precision<fp32>} : vector<8x128xf32>, vector<128x128xf32>, vector<8x128xf32> -> vector<8x128xf32>
    %67 = tpu.iota {dimensions = array<i32: 1>} : vector<1x128xi32>
    %c16_i32 = arith.constant 16 : i32
    %68 = vector.broadcast %c16_i32 : i32 to vector<1x128xi32>
    %69 = arith.cmpi slt, %67, %68 : vector<1x128xi32>
    %cst_30 = arith.constant dense<0.000000e+00> : vector<8xf32>
    %70 = vector.multi_reduction <add>, %66, %cst_30 [1] : vector<8x128xf32> to vector<8xf32>
    %71 = vector.shape_cast %70 : vector<8xf32> to vector<8x1xf32>
    %cst_31 = arith.constant 6.250000e-02 : f32
    %72 = vector.broadcast %cst_31 : f32 to vector<8x1xf32>
    %73 = arith.mulf %71, %72 : vector<8x1xf32>
    %74 = vector.broadcast %73 : vector<8x1xf32> to vector<8x128xf32>
    %75 = arith.subf %66, %74 : vector<8x128xf32>
    %76 = arith.mulf %75, %75 : vector<8x128xf32>
    %cst_32 = arith.constant 0.000000e+00 : f32
    %77 = vector.shape_cast %69 : vector<1x128xi1> to vector<1x128xi1>
    %78 = vector.broadcast %77 : vector<1x128xi1> to vector<8x128xi1>
    %79 = vector.broadcast %cst_32 : f32 to vector<8x128xf32>
    %80 = arith.select %78, %76, %79 : vector<8x128xi1>, vector<8x128xf32>
    %cst_33 = arith.constant dense<0.000000e+00> : vector<8xf32>
    %81 = vector.multi_reduction <add>, %80, %cst_33 [1] : vector<8x128xf32> to vector<8xf32>
    %82 = vector.shape_cast %81 : vector<8xf32> to vector<8x1xf32>
    %cst_34 = arith.constant 6.250000e-02 : f32
    %83 = vector.broadcast %cst_34 : f32 to vector<8x1xf32>
    %84 = arith.mulf %82, %83 : vector<8x1xf32>
    %cst_35 = arith.constant 9.99999974E-6 : f32
    %85 = vector.broadcast %cst_35 : f32 to vector<8x1xf32>
    %86 = arith.addf %84, %85 : vector<8x1xf32>
    %87 = math.rsqrt %86 : vector<8x1xf32>
    %88 = vector.broadcast %87 : vector<8x1xf32> to vector<8x128xf32>
    %89 = arith.mulf %75, %88 : vector<8x128xf32>
    %c0_36 = arith.constant 0 : index
    %c0_37 = arith.constant 0 : index
    %90 = vector.load %arg8[%c0_36, %c0_37] : memref<1x128xf32, #tpu.memory_space<vmem>>, vector<1x128xf32>
    %91 = vector.broadcast %90 : vector<1x128xf32> to vector<8x128xf32>
    %92 = arith.mulf %89, %91 : vector<8x128xf32>
    %c0_38 = arith.constant 0 : index
    %c0_39 = arith.constant 0 : index
    %93 = vector.load %arg9[%c0_38, %c0_39] : memref<1x128xf32, #tpu.memory_space<vmem>>, vector<1x128xf32>
    %94 = vector.broadcast %93 : vector<1x128xf32> to vector<8x128xf32>
    %95 = arith.addf %92, %94 : vector<8x128xf32>
    %cst_40 = arith.constant -1.000000e+30 : f32
    %96 = vector.shape_cast %69 : vector<1x128xi1> to vector<1x128xi1>
    %97 = vector.broadcast %96 : vector<1x128xi1> to vector<8x128xi1>
    %98 = vector.broadcast %cst_40 : f32 to vector<8x128xf32>
    %99 = arith.select %97, %95, %98 : vector<8x128xi1>, vector<8x128xf32>
    %cst_41 = arith.constant dense<0xFF800000> : vector<8xf32>
    %100 = vector.multi_reduction <maximumf>, %99, %cst_41 [1] : vector<8x128xf32> to vector<8xf32>
    %101 = vector.shape_cast %100 : vector<8xf32> to vector<8x1xf32>
    %102 = vector.broadcast %101 : vector<8x1xf32> to vector<8x128xf32>
    %103 = arith.subf %99, %102 : vector<8x128xf32>
    %104 = math.exp %103 : vector<8x128xf32>
    %cst_42 = arith.constant dense<0.000000e+00> : vector<8xf32>
    %105 = vector.multi_reduction <add>, %104, %cst_42 [1] : vector<8x128xf32> to vector<8xf32>
    %106 = vector.shape_cast %105 : vector<8xf32> to vector<8x1xf32>
    %107 = vector.broadcast %106 : vector<8x1xf32> to vector<8x128xf32>
    %108 = arith.divf %104, %107 : vector<8x128xf32>
    %c0_43 = arith.constant 0 : index
    %c0_44 = arith.constant 0 : index
    %109 = vector.load %arg10[%c0_43, %c0_44] : memref<8x128xf32, #tpu.memory_space<vmem>>, vector<8x128xf32>
    tpu.vector_store %arg10[%c0_43, %c0_44], %108 {strides = array<i32>} : memref<8x128xf32, #tpu.memory_space<vmem>>, vector<8x128xf32>,
    return
  }
}

</mosaic_0001>

<bundles_post_ra>
// kernel: tpu_custom_call.1
= control target key start
LH: loop header
LB: loop body
LE: loop exit
PB: predicated region body
PF: predicated region fallthrough
CT: control target
= control target key end

     0   :  { %15 = vsyncpa [#allocation3], 0  ;;  %s4895_s0 = inlined_call_operand.hbm [shape: f32[8,128], index: 0, kind: input, shape index: {}]   ;;  %s4896_s1 = inlined_call_operand.hbm [shape: f32[128,256], index: 1, kind: input, shape index: {}]   ;;  %s4897_s2 = inlined_call_operand.vmem [shape: f32[1,256], index: 2, kind: input, shape index: {}]   ;;  %s4898_s3 = inlined_call_operand.vmem [shape: f32[1,256], index: 3, kind: input, shape index: {}]   ;;  %s4899_s4 = inlined_call_operand.vmem [shape: f32[1,256], index: 4, kind: input, shape index: {}]   ;;  %s4900_s5 = inlined_call_operand.hbm [shape: f32[256,128], index: 5, kind: input, shape index: {}]   ;;  %s4901_s6 = inlined_call_operand.vmem [shape: f32[1,128], index: 6, kind: input, shape index: {}]   ;;  %s4902_s7 = inlined_call_operand.hbm [shape: f32[128,128], index: 7, kind: input, shape index: {}]   ;;  %s4903_s8 = inlined_call_operand.vmem [shape: f32[1,128], index: 8, kind: input, shape index: {}]   ;;  %s4904_s9 = inlined_call_operand.vmem [shape: f32[1,128], index: 9, kind: input, shape index: {}]   ;;  %s4905_s10 = inlined_call_operand.hbm [shape: f32[8,128], index: 10, kind: output, shape index: {}]  }
   0x1   :  { %16 = vsyncpa [#allocation6], 0 }
   0x2   :  { %17 = vsyncpa [#allocation9], 0 }
   0x3   :  { %18 = vsyncpa [#allocation4], 0  ;;  %s3319_s13 = smov [#allocation5]  }
   0x4   :  { %s34_s14 = sshll.u32 %s3319_s13, 4  ;;  %s35_s14 = int_to_ptr.vmem [resolvable:$true] %s34_s14 }
   0x5   :  { %s3219_s15 = scalar_lea.vmem %s35_s14, 4096  ;;  %p3224_p1 = scmp.lt.s32.totalorder %s35_s14, %s35_s14 }
   0x6   :  { %p3220_p0 = scmp.ne.s32.totalorder %s35_s14, %s3219_s15  ;;  %p3225_p2 = scmp.lt.s32.totalorder %s3219_s15, %s3219_s15 }
   0x8   :  { %p3226_p3 = por %p3225_p2, %p3224_p1 }
   0xa   :  { %p3227_p4 = pnand %p3226_p3, %p3220_p0 }
   0xc   :  { %3230 = shalt.err (!%p3227_p4)
}
   0xd   :  { %s3320_s16 = smov 256   ;;  %s3321_s17 = smov 16  }
   0xe   :  { %40 = dma.hbm_to_vmem [thread:$0]  %s4896_s1, 4096, %s35_s14, [#allocation6], %s3320_s16, %s3320_s16, %s3321_s17  }
   0xf   :  { %s3322_s20 = smov [#allocation2]   ;;  %s3323_s22 = smov [#allocation7]  }
  0x10   :  { %s25_s21 = sshll.u32 %s3322_s20, 4  ;;  %s52_s23 = sshll.u32 %s3323_s22, 4  ;;  %s26_s21 = int_to_ptr.vmem [resolvable:$true] %s25_s21  ;;  %s53_s23 = int_to_ptr.vmem [resolvable:$true] %s52_s23 }
  0x11   :  { %s3239_s24 = scalar_lea.vmem %s26_s21, 128  ;;  %p3244_p6 = scmp.lt.s32.totalorder %s26_s21, %s26_s21 }
  0x12   :  { %p3240_p5 = scmp.ne.s32.totalorder %s26_s21, %s3239_s24  ;;  %p3245_p7 = scmp.lt.s32.totalorder %s3239_s24, %s3239_s24 }
  0x14   :  { %p3246_p8 = por %p3245_p7, %p3244_p6 }
  0x16   :  { %p3247_p9 = pnand %p3246_p8, %p3240_p5 }
  0x18   :  { %3250 = shalt.err (!%p3247_p9)
}
  0x19   :  { %28 = dma.hbm_to_vmem [thread:$0]  %s4895_s0, 128, %s26_s21, [#allocation3]  }
  0x1a   :  { %s3259_s27 = scalar_lea.vmem %s53_s23, 4096  ;;  %p3264_p11 = scmp.lt.s32.totalorder %s53_s23, %s53_s23 }
  0x1b   :  { %p3260_p10 = scmp.ne.s32.totalorder %s53_s23, %s3259_s27  ;;  %p3265_p12 = scmp.lt.s32.totalorder %s3259_s27, %s3259_s27 }
  0x1d   :  { %p3266_p13 = por %p3265_p12, %p3264_p11 }
  0x1f   :  { %p3267_p0 = pnand %p3266_p13, %p3260_p10 }
  0x21   :  { %3270 = shalt.err (!%p3267_p0)
}
  0x22   :  { %s3324_s1 = smov 128   ;;  %s3325_s28 = smov 8  }
  0x23   :  { %58 = dma.hbm_to_vmem [thread:$0]  %s4900_s5, 4096, %s53_s23, [#allocation6], %s3324_s1, %s3324_s1, %s3325_s28  }
  0x24   :  { %s3326_s11 = smov [#allocation8]  }
  0x25   :  { %s66_s12 = sshll.u32 %s3326_s11, 4  ;;  %s67_s12 = int_to_ptr.vmem [resolvable:$true] %s66_s12 }
  0x26   :  { %s3279_s13 = scalar_lea.vmem %s67_s12, 2048  ;;  %p3284_p2 = scmp.lt.s32.totalorder %s67_s12, %s67_s12 }
  0x27   :  { %p3280_p1 = scmp.ne.s32.totalorder %s67_s12, %s3279_s13  ;;  %p3285_p3 = scmp.lt.s32.totalorder %s3279_s13, %s3279_s13 }
  0x29   :  { %p3286_p4 = por %p3285_p3, %p3284_p2 }
  0x2b   :  { %p3287_p5 = pnand %p3286_p4, %p3280_p1 }
  0x2d   :  { %3290 = shalt.err (!%p3287_p5)
}
  0x2e   :  { %72 = dma.hbm_to_vmem [thread:$0]  %s4902_s7, 2048, %s67_s12, [#allocation9], %s3324_s1, %s3324_s1, %s3325_s28  }
  0x2f   :  { %3311 = dma.done.wait [#allocation3], 128  }
  0x30   :  { %3312 = vsyncadd [#allocation3], 4294967168 }
  0x31   :  { %3313 = dma.done.wait [#allocation6], 8192  }
  0x32   :  { %3314 = vsyncadd [#allocation6], 4294959104 }
  0x33   :  { %3315 = dma.done.wait [#allocation9], 2048  }
  0x34   :  { %3316 = vsyncadd [#allocation9], 4294965248  ;;  %v4920_v0 = vmov 0.0   ;;  %v121_v1 = vld [vmem:[#allocation5 + $0xf8] sm:$0xff]  ;;  %v120_v2 = vld [vmem:[#allocation5 + $0xf0] sm:$0xff]  ;;  %vm3328_vm1 = vmmov 0  }
  0x35   :  { %230 = vmatprep.mubr.f32.mxu0 %v4920_v0  ;;  %466 = vmatprep.mubr.f32.mxu1 %v4920_v0  ;;  %v119_v3 = vld [vmem:[#allocation5 + $0xe8] sm:$0xff]  ;;  %v3399_v4 = vand.u32 4294901760, %v121_v1  ;;  %v3401_v5 = vand.u32 4294901760, %v120_v2  ;;  %v118_v7 = vld [vmem:[#allocation5 + $0xe0] sm:$0xff]  ;;  %v117_v8 = vld [vmem:[#allocation5 + $0xd8] sm:$0xff]  ;;  %s3329_s21 = smov [#allocation10]  }
  0x36   :  { %v3403_v6 = vand.u32 4294901760, %v119_v3  ;;  %v116_v9 = vld [vmem:[#allocation5 + $0xd0] sm:$0xff]  ;;  %v3405_v10 = vand.u32 4294901760, %v118_v7  ;;  %v3407_v11 = vand.u32 4294901760, %v117_v8  ;;  %v115_v13 = vld [vmem:[#allocation5 + $0xc8] sm:$0xff]  ;;  %v114_v14 = vld [vmem:[#allocation5 + $0xc0] sm:$0xff] }
  0x37   :  { %v3409_v12 = vand.u32 4294901760, %v116_v9  ;;  %v113_v15 = vld [vmem:[#allocation5 + $0xb8] sm:$0xff]  ;;  %135 = vmatprep.subr.mxu0 %v3399_v4  ;;  %v3412_v16 = vand.u32 4294901760, %v115_v13  ;;  %v3414_v17 = vand.u32 4294901760, %v114_v14  ;;  %v3419_v19 = vsub.f32 %v121_v1, %v3399_v4  ;;  %v3421_v20 = vld [vmem:[#allocation5 + $0xb0] sm:$0xff]  ;;  %v3423_v21 = vld [vmem:[#allocation5 + $0xa8] sm:$0xff] }
  0x38   :  { %v3416_v18 = vand.u32 4294901760, %v113_v15  ;;  %v3425_v22 = vld [vmem:[#allocation5 + $0xa0] sm:$0xff]  ;;  %137 = vmatpush1.msra.mxu0 %v3401_v5  ;;  %v3429_v23 = vand.u32 4294901760, %v3421_v20  ;;  %v3432_v24 = vsub.f32 %v120_v2, %v3401_v5  ;;  %v3435_v25 = vand.u32 4294901760, %v3423_v21  ;;  %v3440_v27 = vld [vmem:[#allocation5 + $0x98] sm:$0xff]  ;;  %v3442_v28 = vld [vmem:[#allocation5 + $0x90] sm:$0xff] }
  0x39   :  { %v3438_v26 = vsub.f32 %v119_v3, %v3403_v6  ;;  %v3444_v29 = vld [vmem:[#allocation5 + $0x88] sm:$0xff]  ;;  %139 = vmatprep.subr.mxu0 %v3403_v6  ;;  %v4918_v30 = vand.u32 4294901760, %v3419_v19  ;;  %v3449_v31 = vand.u32 4294901760, %v3425_v22  ;;  %v3452_v32 = vsub.f32 %v118_v7, %v3405_v10  ;;  %v3466_v38 = vld [vmem:[#allocation5 + $0x80] sm:$0xff]  ;;  %v3490_v47 = vld [vmem:[#allocation5 + $0x78] sm:$0xff]  ;;  %s2654_s22 = sshll.u32 %s3329_s21, 4  ;;  %s2655_s22 = int_to_ptr.vmem [resolvable:$true] %s2654_s22 }
  0x3a   :  { %v3455_v33 = vand.u32 4294901760, %v3440_v27  ;;  %141 = vmatpush1.msra.mxu0 %v3405_v10  ;;  %v4917_v34 = vand.u32 4294901760, %v3432_v24  ;;  %v3461_v36 = vsub.f32 %v117_v8, %v3407_v11  ;;  %v3464_v37 = vand.u32 4294901760, %v3442_v28  ;;  %v3500_v52 = vld [vmem:[#allocation5 + $0x70] sm:$0xff]  ;;  %v3507_v57 = vld [vmem:[#allocation5 + $0x68] sm:$0xff]  ;;  %v3519_v62 = vld [vmem:[#allocation5 + $0x60] sm:$0xff]  ;;  %p3296_p7 = scmp.lt.s32.totalorder %s2655_s22, %s2655_s22 }
  0x3b   :  { %5055 = vst [vmem:[#allocation15_spill] sm:$0xff] %v3449_v31  ;;  %v4915_v35 = vand.u32 4294901760, %v3438_v26  ;;  %143 = vmatprep.subr.mxu0 %v3407_v11  ;;  %v245_v39 = vsub.f32 %v3419_v19, %v4918_v30  ;;  %v4913_v40 = vand.u32 4294901760, %v3452_v32  ;;  %v3474_v41 = vsub.f32 %v116_v9, %v3409_v12  ;;  %v3531_v7 = vld [vmem:[#allocation5 + $0x58] sm:$0xff] }
  0x3c   :  { %5056 = vst [vmem:[#allocation16_spill] sm:$0xff] %v3455_v33  ;;  %5057 = vst [vmem:[#allocation17_spill] sm:$0xff] %v3464_v37  ;;  %v3477_v42 = vand.u32 4294901760, %v3444_v29  ;;  %145 = vmatpush1.msra.mxu0 %v3409_v12  ;;  %v251_v43 = vsub.f32 %v3432_v24, %v4917_v34  ;;  %v4912_v45 = vand.u32 4294901760, %v3461_v36  ;;  %v3488_v46 = vsub.f32 %v115_v13, %v3412_v16  ;;  %v3632_v34 = vld [vmem:[#allocation5 + $0x20] sm:$0xff] }
  0x3d   :  { %v257_v44 = vsub.f32 %v3438_v26, %v4915_v35  ;;  %147 = vmatprep.subr.mxu0 %v3412_v16  ;;  %v246_v48 = vand.u32 4294901760, %v245_v39  ;;  %v263_v49 = vsub.f32 %v3452_v32, %v4913_v40  ;;  %v4910_v50 = vand.u32 4294901760, %v3474_v41  ;;  %v3622_v35 = vld [vmem:[#allocation5 + $0x28] sm:$0xff] }
  0x3e   :  { %5058 = vst [vmem:[#allocation18_spill] sm:$0xff] %v3477_v42  ;;  %v3498_v51 = vand.u32 4294901760, %v3466_v38  ;;  %149 = vmatpush1.msra.mxu0 %v3414_v17  ;;  %v252_v53 = vand.u32 4294901760, %v251_v43  ;;  %v269_v55 = vsub.f32 %v3461_v36, %v4912_v45  ;;  %v4908_v56 = vand.u32 4294901760, %v3488_v46  ;;  %v3609_v45 = vld [vmem:[#allocation5 + $0x30] sm:$0xff] }
  0x3f   :  { %v258_v54 = vand.u32 4294901760, %v257_v44  ;;  %151 = vmatprep.subr.mxu0 %v3416_v18  ;;  %247 = vmatprep.subr.mxu1 %v246_v48  ;;  %v264_v58 = vand.u32 4294901760, %v263_v49  ;;  %v275_v59 = vsub.f32 %v3474_v41, %v4910_v50  ;;  %v3514_v60 = vsub.f32 %v114_v14, %v3414_v17 }
  0x40   :  { %5059 = vst [vmem:[#allocation19_spill] sm:$0xff] %v3498_v51  ;;  %v3517_v61 = vand.u32 4294901760, %v3490_v47  ;;  %153 = vmatpush1.msra.mxu0 %v3429_v23  ;;  %253 = vmatpush1.msra.mxu1 %v252_v53  ;;  %v270_v63 = vand.u32 4294901760, %v269_v55  ;;  %v281_v1 = vsub.f32 %v3488_v46, %v4908_v56  ;;  %v3526_v2 = vsub.f32 %v113_v15, %v3416_v18  ;;  %v3542_v15 = vld [vmem:[#allocation5 + $0x50] sm:$0xff] }
  0x41   :  { %v3529_v3 = vand.u32 4294901760, %v3500_v52  ;;  %155 = vmatprep.subr.mxu0 %v3435_v25  ;;  %259 = vmatprep.subr.mxu1 %v258_v54  ;;  %v276_v8 = vand.u32 4294901760, %v275_v59  ;;  %v4907_v9 = vand.u32 4294901760, %v3514_v60  ;;  %v3537_v13 = vsub.f32 %v3421_v20, %v3429_v23 }
  0x42   :  { %5060 = vst [vmem:[#allocation20_spill] sm:$0xff] %v3517_v61  ;;  %v3540_v14 = vand.u32 4294901760, %v3507_v57  ;;  %157 = vmatpush1.msra.mxu0 %v3449_v31  ;;  %265 = vmatpush1.msra.mxu1 %v264_v58  ;;  %v282_v39 = vand.u32 4294901760, %v281_v1  ;;  %v4906_v43 = vand.u32 4294901760, %v3526_v2  ;;  %v3548_v44 = vsub.f32 %v3423_v21, %v3435_v25  ;;  %v3565_v21 = vld [vmem:[#allocation5 + $0x48] sm:$0xff] }
  0x43   :  { %5061 = vst [vmem:[#allocation21_spill] sm:$0xff] %v3529_v3  ;;  %v3551_v48 = vand.u32 4294901760, %v3519_v62  ;;  %159 = vmatprep.subr.mxu0 %v3455_v33  ;;  %271 = vmatprep.subr.mxu1 %v270_v63  ;;  %v287_v20 = vsub.f32 %v3514_v60, %v4907_v9  ;;  %v4909_v49 = vand.u32 4294901760, %v3537_v13  ;;  %v3560_v53 = vsub.f32 %v3425_v22, %v3449_v31  ;;  %v3588_v9 = vld [vmem:[#allocation5 + $0x40] sm:$0xff] }
  0x44   :  { %5062 = vst [vmem:[#allocation22_spill] sm:$0xff] %v3540_v14  ;;  %v3563_v54 = vand.u32 4294901760, %v3531_v7  ;;  %161 = vmatpush1.msra.mxu0 %v3464_v37  ;;  %277 = vmatpush1.msra.mxu1 %v276_v8  ;;  %v293_v55 = vsub.f32 %v3526_v2, %v4906_v43  ;;  %v4911_v58 = vand.u32 4294901760, %v3548_v44  ;;  %v3574_v59 = vsub.f32 %v3440_v27, %v3455_v33  ;;  %v89_v33 = vld [vmem:[#allocation2] sm:$0xff] }
  0x45   :  { %5063 = vst [vmem:[#allocation23_spill] sm:$0xff] %v3551_v48  ;;  %v3577_v22 = vand.u32 4294901760, %v3542_v15  ;;  %163 = vmatprep.subr.mxu0 %v3477_v42  ;;  %283 = vmatprep.subr.mxu1 %v282_v39  ;;  %v288_v63 = vand.u32 4294901760, %v287_v20  ;;  %v299_v1 = vsub.f32 %v3537_v13, %v4909_v49  ;;  %v4914_v8 = vand.u32 4294901760, %v3560_v53  ;;  %v3598_v49 = vld [vmem:[#allocation5 + $0x38] sm:$0xff] }
  0x46   :  { %5064 = vst [vmem:[#allocation24_spill] sm:$0xff] %v3563_v54  ;;  %v3586_v43 = vsub.f32 %v3442_v28, %v3464_v37  ;;  %165 = vmatpush1.msra.mxu0 %v3498_v51  ;;  %v294_v27 = vand.u32 4294901760, %v293_v55  ;;  %v305_v39 = vsub.f32 %v3548_v44, %v4911_v58  ;;  %v4916_v20 = vand.u32 4294901760, %v3574_v59 }
  0x47   :  { %5065 = vst [vmem:[#allocation25_spill] sm:$0xff] %v3577_v22  ;;  %v3596_v56 = vand.u32 4294901760, %v3565_v21  ;;  %289 = vmatpush1.msra.mxu1 %v288_v63  ;;  %167 = vmatprep.subr.mxu0 %v3517_v61  ;;  %v300_v28 = vand.u32 4294901760, %v299_v1  ;;  %v311_v50 = vsub.f32 %v3560_v53, %v4914_v8  ;;  %v3607_v58 = vsub.f32 %v3444_v29, %v3477_v42 }
  0x48   :  { %v4919_v55 = vand.u32 4294901760, %v3586_v43  ;;  %295 = vmatprep.subr.mxu1 %v294_v27  ;;  %169 = vmatpush1.msra.mxu0 %v3529_v3  ;;  %v306_v40 = vand.u32 4294901760, %v305_v39  ;;  %v317_v63 = vsub.f32 %v3574_v59, %v4916_v20  ;;  %v3616_v1 = vand.u32 4294901760, %v3588_v9 }
  0x49   :  { %5066 = vst [vmem:[#allocation26_spill] sm:$0xff] %v3596_v56  ;;  %v3620_v8 = vsub.f32 %v3466_v38, %v3498_v51  ;;  %301 = vmatpush1.msra.mxu1 %v300_v28  ;;  %171 = vmatprep.subr.mxu0 %v3540_v14  ;;  %v312_v29 = vand.u32 4294901760, %v311_v50  ;;  %v4924_v39 = vand.u32 4294901760, %v3607_v58  ;;  %v3630_v20 = vand.u32 4294901760, %v3598_v49 }
  0x4a   :  { %5067 = vst [vmem:[#allocation27_spill] sm:$0xff] %v3616_v1  ;;  %v323_v27 = vsub.f32 %v3586_v43, %v4919_v55  ;;  %307 = vmatprep.subr.mxu1 %v306_v40  ;;  %173 = vmatpush1.msra.mxu0 %v3551_v48  ;;  %v318_v38 = vand.u32 4294901760, %v317_v63  ;;  %v3638_v50 = vsub.f32 %v3490_v47, %v3517_v61  ;;  %v3641_v30 = vand.u32 4294901760, %v3609_v45  ;;  %v3643_v55 = vld [vmem:[#allocation5 + $0x18] sm:$0xff] }
  0x4b   :  { %v4927_v28 = vand.u32 4294901760, %v3620_v8  ;;  %313 = vmatpush1.msra.mxu1 %v312_v29  ;;  %175 = vmatprep.subr.mxu0 %v3563_v54  ;;  %v329_v40 = vsub.f32 %v3607_v58, %v4924_v39  ;;  %v3651_v63 = vsub.f32 %v3500_v52, %v3529_v3  ;;  %v3654_v47 = vand.u32 4294901760, %v3622_v35  ;;  %v3668_v52 = vld [vmem:[#allocation5 + $0x10] sm:$0xff] }
  0x4c   :  { %5068 = vst [vmem:[#allocation28_spill] sm:$0xff] %v3641_v30  ;;  %v324_v0 = vand.u32 4294901760, %v323_v27  ;;  %319 = vmatprep.subr.mxu1 %v318_v38  ;;  %177 = vmatpush1.msra.mxu0 %v3577_v22  ;;  %v3663_v61 = vsub.f32 %v3507_v57, %v3540_v14  ;;  %v3666_v39 = vand.u32 4294901760, %v3632_v34  ;;  %v3677_v27 = vand.u32 4294901760, %v3643_v55  ;;  %v3679_v57 = vld [vmem:[#allocation5 + $0x8] sm:$0xff] }
  0x4d   :  { %5069 = vst [vmem:[#allocation29_spill] sm:$0xff] %v3654_v47  ;;  %v335_v29 = vsub.f32 %v3620_v8, %v4927_v28  ;;  %179 = vmatprep.subr.mxu0 %v3596_v56  ;;  %v330_v38 = vand.u32 4294901760, %v329_v40  ;;  %v3674_v28 = vsub.f32 %v3519_v62, %v3551_v48  ;;  %v5071_v51 = vand.u32 4294901760, %v3638_v50  ;;  %v3702_v40 = vld [vmem:[#allocation5] sm:$0xff] }
  0x4e   :  { %5070 = vst [vmem:[#allocation30_spill] sm:$0xff] %v3666_v39  ;;  %325 = vmatpush1.msra.mxu1 %v324_v0  ;;  %181 = vmatpush1.msra.mxu0 %v3616_v1  ;;  %v3688_v3 = vsub.f32 %v3531_v7, %v3563_v54  ;;  %v5072_v62 = vand.u32 4294901760, %v3651_v63  ;;  %v3710_v42 = vand.u32 4294901760, %v3679_v57  ;;  %v3726_v31 = vand.u32 4294901760, %v3702_v40 }
  0x4f   :  { %v336_v14 = vand.u32 4294901760, %v335_v29  ;;  %v341_v0 = vsub.f32 %v3638_v50, %v5071_v51  ;;  %331 = vmatprep.subr.mxu1 %v330_v38  ;;  %183 = vmatprep.subr.mxu0 %v3630_v20  ;;  %v3696_v29 = vand.u32 4294901760, %v3668_v52  ;;  %v3700_v51 = vsub.f32 %v3542_v15, %v3577_v22 }
  0x50   :  { %v347_v48 = vsub.f32 %v3651_v63, %v5072_v62  ;;  %185 = vmatpush1.msra.mxu0 %v3641_v30  ;;  %v5074_v38 = vand.u32 4294901760, %v3663_v61  ;;  %v4946_v62 = vand.u32 4294901760, %v3688_v3  ;;  %v5075_v15 = vand.u32 4294901760, %v3674_v28 }
  0x51   :  { %5073 = vst [vmem:[#allocation31_spill] sm:$0xff] %v3696_v29  ;;  %337 = vmatpush1.msra.mxu1 %v336_v14  ;;  %v342_v7 = vand.u32 4294901760, %v341_v0  ;;  %187 = vmatprep.subr.mxu0 %v3654_v47  ;;  %v3719_v0 = vsub.f32 %v3565_v21, %v3596_v56  ;;  %v5076_v21 = vand.u32 4294901760, %v3700_v51 }
  0x52   :  { %v353_v54 = vsub.f32 %v3663_v61, %v5074_v38  ;;  %v348_v37 = vand.u32 4294901760, %v347_v48  ;;  %v359_v22 = vsub.f32 %v3674_v28, %v5075_v15  ;;  %189 = vmatpush1.msra.mxu0 %v3666_v39  ;;  %v365_v48 = vsub.f32 %v3688_v3, %v4946_v62 }
  0x53   :  { %343 = vmatprep.subr.mxu1 %v342_v7  ;;  %v3730_v15 = vsub.f32 %v3588_v9, %v3616_v1  ;;  %191 = vmatprep.subr.mxu0 %v3677_v27  ;;  %v4949_v7 = vand.u32 4294901760, %v3719_v0  ;;  %v3739_v62 = vsub.f32 %v3598_v49, %v3630_v20 }
  0x54   :  { %v354_v38 = vand.u32 4294901760, %v353_v54  ;;  %349 = vmatpush1.msra.mxu1 %v348_v37  ;;  %v360_v14 = vand.u32 4294901760, %v359_v22  ;;  %v371_v54 = vsub.f32 %v3700_v51, %v5076_v21  ;;  %v366_v56 = vand.u32 4294901760, %v365_v48  ;;  %193 = vmatpush1.msra.mxu0 %v3696_v29 }
  0x55   :  { %v4952_v9 = vand.u32 4294901760, %v3730_v15  ;;  %v3743_v37 = vand.u32 4294901760, %v89_v33  ;;  %v3747_v22 = vsub.f32 %v3609_v45, %v3641_v30  ;;  %195 = vmatprep.subr.mxu0 %v3710_v42  ;;  %v377_v49 = vsub.f32 %v3719_v0, %v4949_v7 }
  0x56   :  { %355 = vmatprep.subr.mxu1 %v354_v38  ;;  %v372_v21 = vand.u32 4294901760, %v371_v54  ;;  %v3756_v48 = vsub.f32 %v3622_v35, %v3654_v47  ;;  %197 = vmatpush1.msra.mxu0 %v3726_v31  ;;  %v3768_v7 = vsub.f32 %v3632_v34, %v3666_v39  ;;  %v5078_v35 = vand.u32 4294901760, %v3739_v62 }
  0x57   :  { %5077 = vst [vmem:[#allocation32_spill] sm:$0xff] %v3743_v37  ;;  %361 = vmatpush1.msra.mxu1 %v360_v14  ;;  %v383_v45 = vsub.f32 %v3730_v15, %v4952_v9  ;;  %v3763_v14 = vsub.f32 %v89_v33, %v3743_v37  ;;  %v378_v38 = vand.u32 4294901760, %v377_v49  ;;  %476 = vmatprep.subr.mxu0 %v3419_v19  ;;  %v5079_v34 = vand.u32 4294901760, %v3747_v22 }
  0x58   :  { %367 = vmatprep.subr.mxu1 %v366_v56  ;;  %v389_v56 = vsub.f32 %v3739_v62, %v5078_v35  ;;  %v4957_v47 = vand.u32 4294901760, %v3756_v48  ;;  %v3777_v33 = vsub.f32 %v3643_v55, %v3677_v27  ;;  %v4961_v49 = vand.u32 4294901760, %v3768_v7 }
  0x59   :  { %373 = vmatpush1.msra.mxu1 %v372_v21  ;;  %v384_v9 = vand.u32 4294901760, %v383_v45  ;;  %v4958_v54 = vand.u32 4294901760, %v3763_v14  ;;  %v395_v21 = vsub.f32 %v3747_v22, %v5079_v34  ;;  %v3790_v55 = vsub.f32 %v3668_v52, %v3696_v29 }
  0x5a   :  { %379 = vmatprep.subr.mxu1 %v378_v38  ;;  %v390_v39 = vand.u32 4294901760, %v389_v56  ;;  %v401_v35 = vsub.f32 %v3756_v48, %v4957_v47  ;;  %v4965_v30 = vand.u32 4294901760, %v3777_v33  ;;  %v407_v38 = vsub.f32 %v3768_v7, %v4961_v49 }
  0x5b   :  { %5080 = vst [vmem:[#allocation33_spill] sm:$0xff] %v3790_v55  ;;  %385 = vmatpush1.msra.mxu1 %v384_v9  ;;  %v234_v45 = vsub.f32 %v3763_v14, %v4958_v54  ;;  %v396_v34 = vand.u32 4294901760, %v395_v21  ;;  %v3800_v56 = vsub.f32 %v3679_v57, %v3710_v42  ;;  %v4964_v9 = vand.u32 4294901760, %v3790_v55 }
  0x5c   :  { %391 = vmatprep.subr.mxu1 %v390_v39  ;;  %v402_v47 = vand.u32 4294901760, %v401_v35  ;;  %v413_v52 = vsub.f32 %v3777_v33, %v4965_v30  ;;  %v3808_v54 = vsub.f32 %v3702_v40, %v3726_v31  ;;  %v408_v29 = vand.u32 4294901760, %v407_v38 }
  0x5d   :  { %v235_v21 = vand.u32 4294901760, %v234_v45  ;;  %397 = vmatpush1.msra.mxu1 %v396_v34  ;;  %v4963_v49 = vand.u32 4294901760, %v3800_v56  ;;  %v419_v39 = vsub.f32 %v3790_v55, %v4964_v9  ;;  %v5082_v38 = vmov 0.0   ;;  %v5094_v9 = vld [vmem:[#allocation26_spill] sm:$0xff] }
  0x5e   :  { %5081 = vst [vmem:[#allocation34_spill] sm:$0xff] %v3808_v54  ;;  %403 = vmatprep.subr.mxu1 %v402_v47  ;;  %v414_v57 = vand.u32 4294901760, %v413_v52  ;;  %v4962_v35 = vand.u32 4294901760, %v3808_v54  ;;  %v5083_v52 = vld [vmem:[#allocation15_spill] sm:$0xff]  ;;  %v5095_v30 = vand.u32 4294901760, %v3419_v19  ;;  %v5102_v19 = vand.u32 4294901760, %v3461_v36 }
  0x5f   :  { %236 = vmatmul.mubr.f32.vlgmr.msra.gmra.mxu0 %v235_v21  ;;  %409 = vmatpush1.msra.mxu1 %v408_v29  ;;  %v425_v40 = vsub.f32 %v3800_v56, %v4963_v49  ;;  %v420_v45 = vand.u32 4294901760, %v419_v39  ;;  %v5084_v21 = vld [vmem:[#allocation16_spill] sm:$0xff]  ;;  %v5086_v39 = vld [vmem:[#allocation18_spill] sm:$0xff]  ;;  %v5093_v49 = vld [vmem:[#allocation25_spill] sm:$0xff] }
  0x60   :  { %479 = vmatpush1.msra.mxu0 %v3432_v24  ;;  %415 = vmatprep.subr.mxu1 %v414_v57  ;;  %v431_v47 = vsub.f32 %v3808_v54, %v4962_v35  ;;  %v5085_v57 = vld [vmem:[#allocation17_spill] sm:$0xff]  ;;  %v5092_v35 = vld [vmem:[#allocation24_spill] sm:$0xff] }
  0x61   :  { %482 = vmatprep.subr.mxu0 %v3438_v26  ;;  %v426_v34 = vand.u32 4294901760, %v425_v40  ;;  %602 = vmatprep.mubr.f32.mxu0 %v5082_v38  ;;  %v5087_v40 = vld [vmem:[#allocation19_spill] sm:$0xff] }
  0x62   :  { %485 = vmatpush1.msra.mxu0 %v3452_v32  ;;  %421 = vmatpush1.msra.mxu1 %v420_v45  ;;  %v432_v29 = vand.u32 4294901760, %v431_v47  ;;  %v5088_v45 = vld [vmem:[#allocation20_spill] sm:$0xff]  ;;  %v5089_v47 = vld [vmem:[#allocation21_spill] sm:$0xff] }
  0x63   :  { %488 = vmatprep.subr.mxu0 %v3461_v36  ;;  %427 = vmatprep.subr.mxu1 %v426_v34  ;;  %v5090_v34 = vld [vmem:[#allocation22_spill] sm:$0xff]  ;;  %v5107_v36 = vand.u32 4294901760, %v3763_v14 }
  0x64   :  { %491 = vmatpush1.msra.mxu0 %v3474_v41  ;;  %433 = vmatpush1.msra.mxu1 %v432_v29  ;;  %v5091_v29 = vld [vmem:[#allocation23_spill] sm:$0xff] }
  0x65   :  { %494 = vmatprep.subr.mxu0 %v3488_v46  ;;  %468 = vmatmul.mubr.f32.vlgmr.msra.gmra.mxu1 %v3743_v37  ;;  %v5096_v37 = vld [vmem:[#allocation28_spill] sm:$0xff] }
  0x66   :  { %497 = vmatpush1.msra.mxu0 %v3514_v60  ;;  %612 = vmatprep.subr.mxu1 %v3399_v4 }
  0x67   :  { %500 = vmatprep.subr.mxu0 %v3526_v2  ;;  %614 = vmatpush1.msra.mxu1 %v3401_v5 }
  0x68   :  { %503 = vmatpush1.msra.mxu0 %v3537_v13  ;;  %616 = vmatprep.subr.mxu1 %v3403_v6 }
  0x69   :  { %506 = vmatprep.subr.mxu0 %v3548_v44  ;;  %618 = vmatpush1.msra.mxu1 %v3405_v10 }
  0x6a   :  { %509 = vmatpush1.msra.mxu0 %v3560_v53  ;;  %620 = vmatprep.subr.mxu1 %v3407_v11 }
  0x6b   :  { %512 = vmatprep.subr.mxu0 %v3574_v59  ;;  %622 = vmatpush1.msra.mxu1 %v3409_v12 }
  0x6c   :  { %515 = vmatpush1.msra.mxu0 %v3586_v43  ;;  %624 = vmatprep.subr.mxu1 %v3412_v16 }
  0x6d   :  { %518 = vmatprep.subr.mxu0 %v3607_v58  ;;  %626 = vmatpush1.msra.mxu1 %v3414_v17 }
  0x6e   :  { %521 = vmatpush1.msra.mxu0 %v3620_v8  ;;  %628 = vmatprep.subr.mxu1 %v3416_v18 }
  0x6f   :  { %524 = vmatprep.subr.mxu0 %v3638_v50  ;;  %630 = vmatpush1.msra.mxu1 %v3429_v23 }
  0x70   :  { %527 = vmatpush1.msra.mxu0 %v3651_v63  ;;  %632 = vmatprep.subr.mxu1 %v3435_v25 }
  0x71   :  { %530 = vmatprep.subr.mxu0 %v3663_v61  ;;  %634 = vmatpush1.msra.mxu1 %v5083_v52 }
  0x72   :  { %533 = vmatpush1.msra.mxu0 %v3674_v28  ;;  %636 = vmatprep.subr.mxu1 %v5084_v21 }
  0x73   :  { %536 = vmatprep.subr.mxu0 %v3688_v3  ;;  %638 = vmatpush1.msra.mxu1 %v5085_v57 }
  0x74   :  { %539 = vmatpush1.msra.mxu0 %v3700_v51  ;;  %640 = vmatprep.subr.mxu1 %v5086_v39 }
  0x75   :  { %542 = vmatprep.subr.mxu0 %v3719_v0  ;;  %642 = vmatpush1.msra.mxu1 %v5087_v40 }
  0x76   :  { %545 = vmatpush1.msra.mxu0 %v3730_v15  ;;  %644 = vmatprep.subr.mxu1 %v5088_v45 }
  0x77   :  { %548 = vmatprep.subr.mxu0 %v3739_v62  ;;  %646 = vmatpush1.msra.mxu1 %v5089_v47 }
  0x78   :  { %551 = vmatpush1.msra.mxu0 %v3747_v22  ;;  %648 = vmatprep.subr.mxu1 %v5090_v34 }
  0x79   :  { %554 = vmatprep.subr.mxu0 %v3756_v48  ;;  %650 = vmatpush1.msra.mxu1 %v5091_v29 }
  0x7a   :  { %557 = vmatpush1.msra.mxu0 %v3768_v7  ;;  %652 = vmatprep.subr.mxu1 %v5092_v35 }
  0x7b   :  { %560 = vmatprep.subr.mxu0 %v3777_v33  ;;  %654 = vmatpush1.msra.mxu1 %v5093_v49  ;;  %v5097_v49 = vand.u32 4294901760, %v3432_v24  ;;  %v5104_v24 = vand.u32 4294901760, %v3474_v41  ;;  %v5109_v41 = vand.u32 4294901760, %v3537_v13  ;;  %v5126_v13 = vand.u32 4294901760, %v3756_v48 }
  0x7c   :  { %563 = vmatpush1.msra.mxu0 %v3790_v55  ;;  %656 = vmatprep.subr.mxu1 %v5094_v9  ;;  %v5098_v55 = vld [vmem:[#allocation29_spill] sm:$0xff]  ;;  %v5099_v9 = vand.u32 4294901760, %v3438_v26  ;;  %v5105_v26 = vand.u32 4294901760, %v3488_v46  ;;  %v5110_v46 = vand.u32 4294901760, %v3548_v44  ;;  %v5128_v44 = vand.u32 4294901760, %v3777_v33 }
  0x7d   :  { %566 = vmatprep.subr.mxu0 %v3800_v56  ;;  %658 = vmatpush1.msra.mxu1 %v3616_v1  ;;  %v5100_v1 = vld [vmem:[#allocation30_spill] sm:$0xff] }
  0x7e   :  { %569 = vmatpush1.msra.mxu0 %v3808_v54  ;;  %660 = vmatprep.subr.mxu1 %v3630_v20  ;;  %v5101_v54 = vand.u32 4294901760, %v3452_v32  ;;  %v5106_v32 = vand.u32 4294901760, %v3514_v60  ;;  %v5111_v60 = vand.u32 4294901760, %v3560_v53  ;;  %v5129_v53 = vld [vmem:[#allocation33_spill] sm:$0xff] }
  0x7f   :  { %605 = vmatmul.mubr.f32.vlgmr.msra.gmra.mxu0 %v3763_v14  ;;  %720 = vmatprep.subr.mxu0 %v5095_v30  ;;  %v5103_v30 = vld [vmem:[#allocation31_spill] sm:$0xff] }
  0x80   :  { %662 = vmatpush1.msra.mxu1 %v5096_v37  ;;  %724 = vmatpush1.msra.mxu0 %v5097_v49 }
  0x81   :  { %664 = vmatprep.subr.mxu1 %v5098_v55  ;;  %728 = vmatprep.subr.mxu0 %v5099_v9 }
  0x82   :  { %666 = vmatpush1.msra.mxu1 %v5100_v1  ;;  %732 = vmatpush1.msra.mxu0 %v5101_v54  ;;  %v5108_v54 = vand.u32 4294901760, %v3526_v2  ;;  %v5112_v2 = vand.u32 4294901760, %v3574_v59  ;;  %v5131_v59 = vld [vmem:[#allocation25_spill] sm:$0xff] }
  0x83   :  { %668 = vmatprep.subr.mxu1 %v3677_v27  ;;  %736 = vmatprep.subr.mxu0 %v5102_v19 }
  0x84   :  { %670 = vmatpush1.msra.mxu1 %v5103_v30  ;;  %740 = vmatpush1.msra.mxu0 %v5104_v24 }
  0x85   :  { %672 = vmatprep.subr.mxu1 %v3710_v42  ;;  %744 = vmatprep.subr.mxu0 %v5105_v26 }
  0x86   :  { %674 = vmatpush1.msra.mxu1 %v3726_v31  ;;  %707 = vmatprep.mubr.f32.mxu1 %v5082_v38 }
  0x87   :  { %748 = vmatpush1.msra.mxu0 %v5106_v32  ;;  %711 = vmatmul.mubr.f32.vlgmr.msra.gmra.mxu1 %v5107_v36  ;;  %v1079_v32 = vld [vmem:[#allocation7 + $0xf8] sm:$0xff] }
  0x88   :  { %752 = vmatprep.subr.mxu0 %v5108_v54  ;;  %886 = vmatprep.subr.mxu1 %v3399_v4  ;;  %v5113_v4 = vand.u32 4294901760, %v3586_v43  ;;  %v5127_v43 = vand.u32 4294901760, %v3768_v7  ;;  %v3999_v36 = vand.u32 4294901760, %v1079_v32 }
  0x89   :  { %756 = vmatpush1.msra.mxu0 %v5109_v41  ;;  %888 = vmatpush1.msra.mxu1 %v3401_v5  ;;  %v5114_v5 = vand.u32 4294901760, %v3607_v58  ;;  %v5130_v58 = vand.u32 4294901760, %v5129_v53  ;;  %v1077_v53 = vld [vmem:[#allocation7 + $0xe8] sm:$0xff] }
  0x8a   :  { %760 = vmatprep.subr.mxu0 %v5110_v46  ;;  %890 = vmatprep.subr.mxu1 %v3403_v6  ;;  %v5115_v6 = vand.u32 4294901760, %v3620_v8  ;;  %v5132_v8 = vand.u32 4294901760, %v3800_v56  ;;  %v4002_v54 = vsub.f32 %v1079_v32, %v3999_v36 }
  0x8b   :  { %764 = vmatpush1.msra.mxu0 %v5111_v60  ;;  %892 = vmatpush1.msra.mxu1 %v3405_v10  ;;  %v5116_v10 = vand.u32 4294901760, %v3638_v50  ;;  %v5134_v50 = vld [vmem:[#allocation34_spill] sm:$0xff] }
  0x8c   :  { %768 = vmatprep.subr.mxu0 %v5112_v2  ;;  %894 = vmatprep.subr.mxu1 %v3407_v11  ;;  %v5117_v11 = vand.u32 4294901760, %v3651_v63  ;;  %v5135_v63 = vand.u32 4294901760, %v5134_v50  ;;  %5138 = vst [vmem:[#allocation15_spill] sm:$0xff] %v4002_v54  ;;  %v4987_v41 = vand.u32 4294901760, %v4002_v54 }
  0x8d   :  { %772 = vmatpush1.msra.mxu0 %v5113_v4  ;;  %896 = vmatpush1.msra.mxu1 %v3409_v12  ;;  %v5118_v12 = vand.u32 4294901760, %v3663_v61  ;;  %v5124_v61 = vand.u32 4294901760, %v3739_v62  ;;  %v5137_v62 = vld [vmem:[#allocation32_spill] sm:$0xff] }
  0x8e   :  { %776 = vmatprep.subr.mxu0 %v5114_v5  ;;  %898 = vmatprep.subr.mxu1 %v3412_v16  ;;  %v5119_v16 = vand.u32 4294901760, %v3674_v28  ;;  %v5133_v28 = vld [vmem:[#allocation26_spill] sm:$0xff]  ;;  %v1315_v46 = vsub.f32 %v4002_v54, %v4987_v41 }
  0x8f   :  { %780 = vmatpush1.msra.mxu0 %v5115_v6  ;;  %900 = vmatpush1.msra.mxu1 %v3414_v17  ;;  %v5120_v17 = vand.u32 4294901760, %v3688_v3  ;;  %v5125_v3 = vand.u32 4294901760, %v3747_v22 }
  0x90   :  { %784 = vmatprep.subr.mxu0 %v5116_v10  ;;  %902 = vmatprep.subr.mxu1 %v3416_v18  ;;  %v5121_v18 = vand.u32 4294901760, %v3700_v51  ;;  %v5136_v51 = vld [vmem:[#allocation27_spill] sm:$0xff]  ;;  %v1316_v60 = vand.u32 4294901760, %v1315_v46 }
  0x91   :  { %788 = vmatpush1.msra.mxu0 %v5117_v11  ;;  %904 = vmatpush1.msra.mxu1 %v3429_v23  ;;  %v5122_v23 = vand.u32 4294901760, %v3719_v0  ;;  %v124_v0 = vlaneseq }
  0x92   :  { %792 = vmatprep.subr.mxu0 %v5118_v12  ;;  %906 = vmatprep.subr.mxu1 %v3435_v25  ;;  %v5123_v25 = vand.u32 4294901760, %v3730_v15 }
  0x93   :  { %796 = vmatpush1.msra.mxu0 %v5119_v16  ;;  %908 = vmatpush1.msra.mxu1 %v5083_v52  ;;  %v4009_v4 = vand.u32 127, %v124_v0 }
  0x94   :  { %800 = vmatprep.subr.mxu0 %v5120_v17  ;;  %910 = vmatprep.subr.mxu1 %v5084_v21 }
  0x95   :  { %804 = vmatpush1.msra.mxu0 %v5121_v18  ;;  %912 = vmatpush1.msra.mxu1 %v5085_v57  ;;  %5139 = vst [vmem:[#allocation16_spill] sm:$0xff] %v4009_v4  ;;  %vm991_vm0 = vcmp.lt.s32.totalorder %v4009_v4, 32  ;;  %v1063_v18 = vld [vmem:[#allocation7 + $0x78] sm:$0xff] }
  0x96   :  { %808 = vmatprep.subr.mxu0 %v5122_v23  ;;  %914 = vmatprep.subr.mxu1 %v5086_v39  ;;  %v4020_v23 = vand.u32 4294901760, %v1063_v18 }
  0x97   :  { %812 = vmatpush1.msra.mxu0 %v5123_v25  ;;  %916 = vmatpush1.msra.mxu1 %v5087_v40  ;;  %v1078_v25 = vld [vmem:[#allocation7 + $0xf0] sm:$0xff] }
  0x98   :  { %816 = vmatprep.subr.mxu0 %v5124_v61  ;;  %918 = vmatprep.subr.mxu1 %v5088_v45 }
  0x99   :  { %820 = vmatpush1.msra.mxu0 %v5125_v3  ;;  %920 = vmatpush1.msra.mxu1 %v5089_v47  ;;  %v4024_v3 = vand.u32 4294901760, %v1078_v25 }
  0x9a   :  { %824 = vmatprep.subr.mxu0 %v5126_v13  ;;  %922 = vmatprep.subr.mxu1 %v5090_v34  ;;  %v1062_v13 = vld [vmem:[#allocation7 + $0x70] sm:$0xff] }
  0x9b   :  { %828 = vmatpush1.msra.mxu0 %v5127_v43  ;;  %924 = vmatpush1.msra.mxu1 %v5091_v29  ;;  %v4027_v43 = vsub.f32 %v1063_v18, %v4020_v23  ;;  %v1072_v18 = vld [vmem:[#allocation7 + $0xc0] sm:$0xff] }
  0x9c   :  { %832 = vmatprep.subr.mxu0 %v5128_v44  ;;  %926 = vmatprep.subr.mxu1 %v5092_v35  ;;  %v4029_v44 = vand.u32 4294901760, %v1062_v13 }
  0x9d   :  { %836 = vmatpush1.msra.mxu0 %v5130_v58  ;;  %928 = vmatpush1.msra.mxu1 %v5131_v59  ;;  %v4035_v59 = vsub.f32 %v1078_v25, %v4024_v3  ;;  %v4986_v50 = vand.u32 4294901760, %v4027_v43 }
  0x9e   :  { %840 = vmatprep.subr.mxu0 %v5132_v8  ;;  %930 = vmatprep.subr.mxu1 %v5133_v28  ;;  %v4037_v8 = vand.u32 4294901760, %v1077_v53  ;;  %v1061_v28 = vld [vmem:[#allocation7 + $0x68] sm:$0xff] }
  0x9f   :  { %844 = vmatpush1.msra.mxu0 %v5135_v63  ;;  %877 = vmatprep.mubr.f32.mxu0 %v5082_v38  ;;  %v4042_v63 = vsub.f32 %v1062_v13, %v4029_v44 }
  0xa0   :  { %932 = vmatpush1.msra.mxu1 %v5136_v51  ;;  %879 = vmatmul.mubr.f32.vlgmr.msra.gmra.mxu0 %v5137_v62  ;;  %v4044_v51 = vand.u32 4294901760, %v1061_v28 }
  0xa1   :  { %934 = vmatprep.subr.mxu1 %v3630_v20  ;;  %981 = vmatprep.mubr.f32.mxu1 %v5082_v38  ;;  %v125_v20 = vshrl.u32 %v124_v0, 7  ;;  %v4984_v0 = vand.u32 4294901760, %v4035_v59 }
  0xa2   :  { %936 = vmatpush1.msra.mxu1 %v5096_v37  ;;  %v122_v37 = vld [vmem:[%s4897_s2] sm:$0x3]  ;;  %2668 = vmatprep.subr.mxu0 %v3999_v36 }
  0xa3   :  { %938 = vmatprep.subr.mxu1 %v5098_v55  ;;  %v3990_v7 = vsub.s32 1, %v125_v20  ;;  %2669 = vmatpush3.msra.mxu0 %v4020_v23 }
  0xa4   :  { %940 = vmatpush1.msra.mxu1 %v5100_v1  ;;  %2670 = vmatprep.subr.mxu0 %v4024_v3 }
  0xa5   :  { %942 = vmatprep.subr.mxu1 %v3677_v27  ;;  %v3995_v27 = vsub.s32 0, %v125_v20  ;;  %v131_v48 = vrot.slane %v122_v37, %v3990_v7  ;;  %2671 = vmatpush3.msra.mxu0 %v4029_v44  ;;  %v4049_v20 = vsub.f32 %v1077_v53, %v4037_v8 }
  0xa6   :  { %944 = vmatpush1.msra.mxu1 %v5103_v30  ;;  %2672 = vmatprep.subr.mxu0 %v4037_v8 }
  0xa7   :  { %946 = vmatprep.subr.mxu1 %v3710_v42  ;;  %2673 = vmatpush3.msra.mxu0 %v4044_v51 }
  0xa8   :  { %948 = vmatpush1.msra.mxu1 %v3726_v31  ;;  %v127_v31 = vrot.slane %v122_v37, %v3995_v27  ;;  %v1060_v37 = vld [vmem:[#allocation7 + $0x60] sm:$0xff] }
  0xa9   :  { %983 = vmatmul.mubr.f32.vlgmr.msra.gmra.mxu1 %v5137_v62  ;;  %2703 = vmatprep.subr.mxu1 %v1316_v60  ;;  %v1076_v62 = vld [vmem:[#allocation7 + $0xe0] sm:$0xff] }
 0x11f   :  { %v237_v15 = vpop.f32.mrf.mxu0 }
 0x120   :  { %v238_v9 = vadd.f32 %v237_v15, %v127_v31  ;;  %v4051_v15 = vand.u32 4294901760, %v1076_v62  ;;  %v1322_v31 = vsub.f32 %v4035_v59, %v4984_v0 }
 0x121   :  { %v239_v1 = vpop.f32.mrf.mxu0 }
 0x122   :  { %v240_v33 = vadd.f32 %v239_v1, %v131_v48  ;;  %v1203_v1 = vsub.f32 %v4027_v43, %v4986_v50  ;;  %v4059_v48 = vsub.f32 %v1061_v28, %v4044_v51  ;;  %2674 = vmatprep.subr.mxu0 %v4051_v15 }
 0x125   :  { %v469_v22 = vpop.f32.mrf.mxu1 }
 0x126   :  { %v470_v39 = vadd.f32 %v469_v22, %v238_v9  ;;  %v4983_v22 = vand.u32 4294901760, %v4042_v63  ;;  %v1204_v9 = vand.u32 4294901760, %v1203_v1 }
 0x127   :  { %v471_v14 = vpop.f32.mrf.mxu1 }
 0x128   :  { %v472_v35 = vadd.f32 %v471_v14, %v240_v33  ;;  %v1075_v14 = vld [vmem:[#allocation7 + $0xd8] sm:$0xff]  ;;  %v4981_v33 = vand.u32 4294901760, %v4049_v20  ;;  %2704 = vmatpush3.msra.mxu1 %v1204_v9 }
 0x13f   :  { %v606_v42 = vpop.f32.mrf.mxu0 }
 0x140   :  { %v607_v47 = vadd.f32 %v606_v42, %v470_v39  ;;  %v4061_v42 = vand.u32 4294901760, %v1060_v37  ;;  %v1323_v39 = vand.u32 4294901760, %v1322_v31 }
 0x141   :  { %v608_v49 = vpop.f32.mrf.mxu0 }
 0x142   :  { %v609_v21 = vadd.f32 %v608_v49, %v472_v35  ;;  %v4069_v49 = vsub.f32 %v1076_v62, %v4051_v15  ;;  %v1210_v35 = vsub.f32 %v4042_v63, %v4983_v22  ;;  %2675 = vmatpush3.msra.mxu0 %v4061_v42  ;;  %2705 = vmatprep.subr.mxu1 %v1323_v39 }
 0x147   :  { %v712_v55 = vpop.f32.mrf.mxu1 }
 0x148   :  { %v713_v19 = vadd.f32 %v712_v55, %v607_v47  ;;  %v4071_v55 = vand.u32 4294901760, %v1075_v14 }
 0x149   :  { %v714_v52 = vpop.f32.mrf.mxu1 }
 0x14a   :  { %v715_v40 = vadd.f32 %v714_v52, %v609_v21  ;;  %v4979_v52 = vand.u32 4294901760, %v4059_v48  ;;  %v4079_v21 = vsub.f32 %v1060_v37, %v4061_v42  ;;  %v4087_v47 = vsub.f32 %v1075_v14, %v4071_v55  ;;  %2676 = vmatprep.subr.mxu0 %v4071_v55  ;;  %v1071_v14 = vld [vmem:[#allocation7 + $0xb8] sm:$0xff] }
 0x14c   :  { %v4974_v60 = vand.u32 4294901760, %v4087_v47 }
 0x160   :  { %v880_v56 = vpop.f32.mrf.mxu0 }
 0x161   :  { %v881_v24 = vadd.f32 %v880_v56, %v713_v19  ;;  %v1059_v56 = vld [vmem:[#allocation7 + $0x58] sm:$0xff]  ;;  %v1217_v19 = vsub.f32 %v4059_v48, %v4979_v52 }
 0x162   :  { %v882_v57 = vpop.f32.mrf.mxu0 }
 0x163   :  { %v883_v34 = vadd.f32 %v882_v57, %v715_v40  ;;  %v1074_v57 = vld [vmem:[#allocation7 + $0xd0] sm:$0xff]  ;;  %v1329_v40 = vsub.f32 %v4049_v20, %v4981_v33 }
 0x165   :  { %v1330_v32 = vand.u32 4294901760, %v1329_v40 }
 0x169   :  { %v984_v45 = vpop.f32.mrf.mxu1 }
 0x16a   :  { %v985_v26 = vadd.f32 %v984_v45, %v881_v24  ;;  %v4977_v45 = vand.u32 4294901760, %v4069_v49  ;;  %v4094_v24 = vand.u32 4294901760, %v1059_v56 }
 0x16b   :  { %v986_v29 = vpop.f32.mrf.mxu1 }
 0x16c   :  { %v987_v30 = vadd.f32 %v986_v29, %v883_v34  ;;  %v1058_v34 = vld [vmem:[#allocation7 + $0x50] sm:$0xff]  ;;  %v1211_v29 = vand.u32 4294901760, %v1210_v35  ;;  %v1336_v46 = vsub.f32 %v4069_v49, %v4977_v45  ;;  %2677 = vmatpush3.msra.mxu0 %v4094_v24  ;;  %v4131_v35 = vand.u32 4294901760, %v1072_v18 }
 0x16e   :  { %1006 = vadd.xlane.f32.xlu0 %v987_v30  ;;  %2706 = vmatpush3.msra.mxu1 %v1211_v29  ;;  %v1337_v25 = vand.u32 4294901760, %v1336_v46  ;;  %v1055_v46 = vld [vmem:[#allocation7 + $0x38] sm:$0xff] }
 0x16f   :  { %2707 = vmatprep.subr.mxu1 %v1330_v32  ;;  %v4151_v32 = vand.u32 4294901760, %v1071_v14 }
 0x172   :  { %992 = vadd.xlane.f32.xlu0 %v985_v26 }
 0x1f7   :  { %v1007_v2 = vpop.xlane.xlu0 %1006 }
 0x1f8   :  { %v1008_v5 = vmul.f32 0.03125, %v1007_v2  ;;  %v4100_v2 = vand.u32 4294901760, %v1074_v57 }
 0x1fa   :  { %v4011_v6 = vsub.f32 %v987_v30, %v1008_v5  ;;  %v4976_v30 = vand.u32 4294901760, %v4079_v21  ;;  %v1057_v5 = vld [vmem:[#allocation7 + $0x48] sm:$0xff]  ;;  %v4115_v13 = vsub.f32 %v1074_v57, %v4100_v2  ;;  %2678 = vmatprep.subr.mxu0 %v4100_v2 }
 0x1fb   :  { %v993_v10 = vpop.xlane.xlu0 %992  ;;  %v4124_v1 = vand.u32 4294901760, %v1057_v5 }
 0x1fc   :  { %v994_v11 = vmul.f32 0.03125, %v993_v10  ;;  %v1010_v12 = vmul.f32 %v4011_v6, %v4011_v6  ;;  %v1218_v10 = vand.u32 4294901760, %v1217_v19 }
 0x1fd   :  { %v4139_v40 = vsub.f32 %v1057_v5, %v4124_v1 }
 0x1fe   :  { %v4016_v16 = vsub.f32 %v985_v26, %v994_v11  ;;  %v1011_v17 = vsel %vm991_vm0, %v1010_v12, 0.0  ;;  %v1073_v26 = vld [vmem:[#allocation7 + $0xc8] sm:$0xff]  ;;  %v1224_v11 = vsub.f32 %v4079_v21, %v4976_v30  ;;  %v4106_v12 = vsub.f32 %v1059_v56, %v4094_v24  ;;  %2708 = vmatpush3.msra.mxu1 %v1218_v10 }
 0x1ff   :  { %1012 = vadd.xlane.f32.xlu1 %v1011_v17  ;;  %v4108_v17 = vand.u32 4294901760, %v1058_v34  ;;  %v4117_v53 = vand.u32 4294901760, %v1073_v26  ;;  %2709 = vmatprep.subr.mxu1 %v1337_v25  ;;  %v4971_v56 = vand.u32 4294901760, %v4115_v13 }
 0x200   :  { %v996_v61 = vmul.f32 %v4016_v16, %v4016_v16  ;;  %v1225_v28 = vand.u32 4294901760, %v1224_v11  ;;  %v4973_v62 = vand.u32 4294901760, %v4106_v12  ;;  %v4978_v11 = vand.u32 4294901760, %v4139_v40 }
 0x201   :  { %v4122_v37 = vsub.f32 %v1058_v34, %v4108_v17  ;;  %2679 = vmatpush3.msra.mxu0 %v4108_v17  ;;  %v4129_v9 = vsub.f32 %v1073_v26, %v4117_v53  ;;  %v1350_v29 = vsub.f32 %v4115_v13, %v4971_v56  ;;  %v4149_v26 = vsub.f32 %v1072_v18, %v4131_v35  ;;  %v1054_v56 = vld [vmem:[#allocation7 + $0x30] sm:$0xff] }
 0x202   :  { %v999_v58 = vsel %vm991_vm0, %v996_v61, 0.0  ;;  %v1343_v61 = vsub.f32 %v4087_v47, %v4974_v60  ;;  %2680 = vmatprep.subr.mxu0 %v4117_v53  ;;  %2710 = vmatpush3.msra.mxu1 %v1225_v28  ;;  %v1231_v57 = vsub.f32 %v4106_v12, %v4973_v62  ;;  %v4174_v62 = vand.u32 4294901760, %v1055_v46  ;;  %v1069_v60 = vld [vmem:[#allocation7 + $0xa8] sm:$0xff] }
 0x203   :  { %1000 = vadd.xlane.f32.xlu1 %v999_v58  ;;  %v1056_v58 = vld [vmem:[#allocation7 + $0x40] sm:$0xff]  ;;  %v4972_v39 = vand.u32 4294901760, %v4122_v37  ;;  %2681 = vmatpush3.msra.mxu0 %v4124_v1  ;;  %v4975_v19 = vand.u32 4294901760, %v4129_v9  ;;  %v1351_v18 = vand.u32 4294901760, %v1350_v29 }
 0x204   :  { %v1344_v31 = vand.u32 4294901760, %v1343_v61  ;;  %v4141_v34 = vand.u32 4294901760, %v1056_v58  ;;  %2682 = vmatprep.subr.mxu0 %v4131_v35  ;;  %v1232_v5 = vand.u32 4294901760, %v1231_v57  ;;  %v1070_v61 = vld [vmem:[#allocation7 + $0xb0] sm:$0xff]  ;;  %v4167_v57 = vsub.f32 %v1071_v14, %v4151_v32 }
 0x205   :  { %v1238_v10 = vsub.f32 %v4122_v37, %v4972_v39  ;;  %v1357_v28 = vsub.f32 %v4129_v9, %v4975_v19  ;;  %v4180_v45 = vand.u32 4294901760, %v1070_v61  ;;  %v4186_v52 = vsub.f32 %v1055_v46, %v4174_v62 }
 0x206   :  { %2711 = vmatprep.subr.mxu1 %v1344_v31  ;;  %v4159_v25 = vsub.f32 %v1056_v58, %v4141_v34  ;;  %2683 = vmatpush3.msra.mxu0 %v4141_v34  ;;  %v4980_v31 = vand.u32 4294901760, %v4149_v26  ;;  %5141 = vst [vmem:[#allocation18_spill] sm:$0xff] %v4167_v57  ;;  %v1245_v58 = vsub.f32 %v4139_v40, %v4978_v11  ;;  %v4985_v30 = vand.u32 4294901760, %v4167_v57 }
 0x207   :  { %2684 = vmatprep.subr.mxu0 %v4151_v32  ;;  %2712 = vmatpush3.msra.mxu1 %v1232_v5  ;;  %v1239_v39 = vand.u32 4294901760, %v1238_v10  ;;  %v1358_v19 = vand.u32 4294901760, %v1357_v28  ;;  %v1053_v5 = vld [vmem:[#allocation7 + $0x28] sm:$0xff]  ;;  %5142 = vst [vmem:[#allocation19_spill] sm:$0xff] %v4186_v52  ;;  %v1068_v28 = vld [vmem:[#allocation7 + $0xa0] sm:$0xff]  ;;  %v4988_v22 = vand.u32 4294901760, %v4186_v52 }
 0x208   :  { %5140 = vst [vmem:[#allocation17_spill] sm:$0xff] %v4159_v25  ;;  %v4982_v29 = vand.u32 4294901760, %v4159_v25  ;;  %2713 = vmatprep.subr.mxu1 %v1351_v18  ;;  %v1364_v14 = vsub.f32 %v4149_v26, %v4980_v31  ;;  %v1246_v10 = vand.u32 4294901760, %v1245_v58  ;;  %v4188_v18 = vand.u32 4294901760, %v1054_v56  ;;  %2685 = vmatpush3.msra.mxu0 %v4174_v62 }
 0x209   :  { %2714 = vmatpush3.msra.mxu1 %v1239_v39  ;;  %v1371_v33 = vsub.f32 %v4167_v57, %v4985_v30  ;;  %v4195_v39 = vsub.f32 %v1070_v61, %v4180_v45  ;;  %v4197_v58 = vand.u32 4294901760, %v1069_v60  ;;  %2686 = vmatprep.subr.mxu0 %v4180_v45  ;;  %v4211_v41 = vand.u32 4294901760, %v1068_v28 }
 0x20a   :  { %v1252_v11 = vsub.f32 %v4159_v25, %v4982_v29  ;;  %2715 = vmatprep.subr.mxu1 %v1358_v19  ;;  %v1365_v31 = vand.u32 4294901760, %v1364_v14  ;;  %v1052_v29 = vld [vmem:[#allocation7 + $0x20] sm:$0xff]  ;;  %v4202_v0 = vsub.f32 %v1054_v56, %v4188_v18  ;;  %v4204_v19 = vand.u32 4294901760, %v1053_v5  ;;  %v1067_v14 = vld [vmem:[#allocation7 + $0x98] sm:$0xff]  ;;  %2687 = vmatpush3.msra.mxu0 %v4188_v18  ;;  %v1050_v25 = vld [vmem:[#allocation7 + $0x10] sm:$0xff] }
 0x20b   :  { %5143 = vst [vmem:[#allocation20_spill] sm:$0xff] %v4195_v39  ;;  %2716 = vmatpush3.msra.mxu1 %v1246_v10  ;;  %v1372_v61 = vand.u32 4294901760, %v1371_v33  ;;  %v4993_v30 = vand.u32 4294901760, %v4195_v39  ;;  %v4209_v50 = vsub.f32 %v1069_v60, %v4197_v58  ;;  %2688 = vmatprep.subr.mxu0 %v4197_v58  ;;  %v1259_v56 = vsub.f32 %v4186_v52, %v4988_v22 }
 0x20c   :  { %v1253_v46 = vand.u32 4294901760, %v1252_v11  ;;  %5144 = vst [vmem:[#allocation21_spill] sm:$0xff] %v4202_v0  ;;  %2717 = vmatprep.subr.mxu1 %v1365_v31  ;;  %v4219_v10 = vsub.f32 %v1053_v5, %v4204_v19  ;;  %v4221_v33 = vand.u32 4294901760, %v1052_v29  ;;  %2689 = vmatpush3.msra.mxu0 %v4204_v19  ;;  %v4231_v22 = vand.u32 4294901760, %v1067_v14  ;;  %v1051_v11 = vld [vmem:[#allocation7 + $0x18] sm:$0xff] }
 0x20d   :  { %5145 = vst [vmem:[#allocation22_spill] sm:$0xff] %v4209_v50  ;;  %v1378_v60 = vsub.f32 %v4195_v39, %v4993_v30  ;;  %v5004_v31 = vand.u32 4294901760, %v4209_v50  ;;  %2690 = vmatprep.subr.mxu0 %v4211_v41  ;;  %v1260_v5 = vand.u32 4294901760, %v1259_v56  ;;  %v5150_v4 = vand.u32 4294901760, %v4202_v0  ;;  %v1066_v30 = vld [vmem:[#allocation7 + $0x90] sm:$0xff] }
 0x20e   :  { %2718 = vmatpush3.msra.mxu1 %v1253_v46  ;;  %5146 = vst [vmem:[#allocation23_spill] sm:$0xff] %v4219_v10  ;;  %5147 = vst [vmem:[#allocation24_spill] sm:$0xff] %v4221_v33  ;;  %v4229_v46 = vsub.f32 %v1068_v28, %v4211_v41  ;;  %v4239_v52 = vsub.f32 %v1052_v29, %v4221_v33  ;;  %2691 = vmatpush3.msra.mxu0 %v4221_v33  ;;  %v1065_v33 = vld [vmem:[#allocation7 + $0x88] sm:$0xff] }
 0x20f   :  { %2719 = vmatprep.subr.mxu1 %v1372_v61  ;;  %5149 = vst [vmem:[#allocation29_spill] sm:$0xff] %v4231_v22  ;;  %v1266_v38 = vsub.f32 %v4202_v0, %v5150_v4  ;;  %v5009_v61 = vand.u32 4294901760, %v4219_v10  ;;  %v1379_v28 = vand.u32 4294901760, %v1378_v60  ;;  %v1385_v39 = vsub.f32 %v4209_v50, %v5004_v31  ;;  %2692 = vmatprep.subr.mxu0 %v4231_v22 }
 0x210   :  { %5148 = vst [vmem:[#allocation28_spill] sm:$0xff] %v4229_v46  ;;  %5151 = vst [vmem:[#allocation30_spill] sm:$0xff] %v4239_v52  ;;  %v5012_v57 = vand.u32 4294901760, %v4229_v46  ;;  %v4247_v56 = vsub.f32 %v1067_v14, %v4231_v22  ;;  %2720 = vmatpush3.msra.mxu1 %v1260_v5  ;;  %v5015_v60 = vand.u32 4294901760, %v4239_v52  ;;  %v4254_v0 = vand.u32 4294901760, %v1051_v11 }
 0x211   :  { %v1267_v4 = vand.u32 4294901760, %v1266_v38  ;;  %v1273_v29 = vsub.f32 %v4219_v10, %v5009_v61  ;;  %2721 = vmatprep.subr.mxu1 %v1379_v28  ;;  %v1386_v31 = vand.u32 4294901760, %v1385_v39  ;;  %v4260_v22 = vand.u32 4294901760, %v1066_v30  ;;  %v1049_v38 = vld [vmem:[#allocation7 + $0x8] sm:$0xff]  ;;  %v1064_v39 = vld [vmem:[#allocation7 + $0x80] sm:$0xff] }
 0x212   :  { %5152 = vst [vmem:[#allocation31_spill] sm:$0xff] %v4247_v56  ;;  %5153 = vst [vmem:[#allocation33_spill] sm:$0xff] %v4254_v0  ;;  %v1392_v14 = vsub.f32 %v4229_v46, %v5012_v57  ;;  %v5020_v50 = vand.u32 4294901760, %v4247_v56  ;;  %v1280_v61 = vsub.f32 %v4239_v52, %v5015_v60  ;;  %v4266_v10 = vsub.f32 %v1051_v11, %v4254_v0  ;;  %v1048_v60 = vld [vmem:[#allocation7] sm:$0xff] }
 0x213   :  { %2722 = vmatpush3.msra.mxu1 %v1267_v4  ;;  %v1274_v5 = vand.u32 4294901760, %v1273_v29  ;;  %v4268_v28 = vand.u32 4294901760, %v1050_v25  ;;  %2693 = vmatpush3.msra.mxu0 %v4254_v0  ;;  %v4275_v4 = vsub.f32 %v1066_v30, %v4260_v22  ;;  %v4277_v29 = vand.u32 4294901760, %v1065_v33 }
 0x214   :  { %5154 = vst [vmem:[#allocation25_spill] sm:$0xff] %v4266_v10  ;;  %2723 = vmatprep.subr.mxu1 %v1386_v31  ;;  %v1393_v57 = vand.u32 4294901760, %v1392_v14  ;;  %v1399_v46 = vsub.f32 %v4247_v56, %v5020_v50  ;;  %2694 = vmatprep.subr.mxu0 %v4260_v22  ;;  %v1281_v11 = vand.u32 4294901760, %v1280_v61  ;;  %v5023_v52 = vand.u32 4294901760, %v4266_v10 }
 0x215   :  { %5155 = vst [vmem:[#allocation26_spill] sm:$0xff] %v4275_v4  ;;  %2724 = vmatpush3.msra.mxu1 %v1274_v5  ;;  %v4282_v0 = vsub.f32 %v1050_v25, %v4268_v28  ;;  %v4284_v31 = vand.u32 4294901760, %v1049_v38  ;;  %2695 = vmatpush3.msra.mxu0 %v4268_v28  ;;  %v5026_v30 = vand.u32 4294901760, %v4275_v4  ;;  %v4289_v50 = vsub.f32 %v1065_v33, %v4277_v29 }
 0x216   :  { %2725 = vmatprep.subr.mxu1 %v1393_v57  ;;  %v1400_v14 = vand.u32 4294901760, %v1399_v46  ;;  %v4291_v56 = vand.u32 4294901760, %v1064_v39  ;;  %2696 = vmatprep.subr.mxu0 %v4277_v29  ;;  %v1287_v25 = vsub.f32 %v4266_v10, %v5023_v52  ;;  %v4301_v57 = vand.u32 4294901760, %v1048_v60 }
 0x217   :  { %5156 = vst [vmem:[#allocation34_spill] sm:$0xff] %v4282_v0  ;;  %5157 = vst [vmem:[#allocation27_spill] sm:$0xff] %v4289_v50  ;;  %2726 = vmatpush3.msra.mxu1 %v1281_v11  ;;  %v5029_v61 = vand.u32 4294901760, %v4282_v0  ;;  %v4299_v5 = vsub.f32 %v1049_v38, %v4284_v31  ;;  %2697 = vmatpush3.msra.mxu0 %v4284_v31  ;;  %v1406_v33 = vsub.f32 %v4275_v4, %v5026_v30 }
 0x218   :  { %2727 = vmatprep.subr.mxu1 %v1400_v14  ;;  %v5032_v46 = vand.u32 4294901760, %v4289_v50  ;;  %v4309_v11 = vsub.f32 %v1064_v39, %v4291_v56  ;;  %2698 = vmatprep.subr.mxu0 %v4291_v56  ;;  %v1288_v52 = vand.u32 4294901760, %v1287_v25  ;;  %v4317_v14 = vsub.f32 %v1048_v60, %v4301_v57 }
 0x219   :  { %5158 = vst [vmem:[#allocation32_spill] sm:$0xff] %v4299_v5  ;;  %v1294_v38 = vsub.f32 %v4282_v0, %v5029_v61  ;;  %v5034_v10 = vand.u32 4294901760, %v4299_v5  ;;  %2699 = vmatpush3.msra.mxu0 %v4301_v57  ;;  %v1407_v30 = vand.u32 4294901760, %v1406_v33 }
 0x21a   :  { %5159 = vst [vmem:[#allocation35_spill] sm:$0xff] %v4309_v11  ;;  %5160 = vst [vmem:[#allocation36_spill] sm:$0xff] %v4317_v14  ;;  %v1413_v39 = vsub.f32 %v4289_v50, %v5032_v46  ;;  %v5037_v4 = vand.u32 4294901760, %v4309_v11  ;;  %2738 = vmatprep.subr.mxu0 %v4002_v54  ;;  %2728 = vmatpush3.msra.mxu1 %v1288_v52  ;;  %v5038_v60 = vand.u32 4294901760, %v4317_v14 }
 0x21b   :  { %v1295_v25 = vand.u32 4294901760, %v1294_v38  ;;  %v1301_v61 = vsub.f32 %v4299_v5, %v5034_v10  ;;  %2729 = vmatprep.subr.mxu1 %v1407_v30 }
 0x21c   :  { %v1414_v0 = vand.u32 4294901760, %v1413_v39  ;;  %v1420_v33 = vsub.f32 %v4309_v11, %v5037_v4  ;;  %v1308_v54 = vsub.f32 %v4317_v14, %v5038_v60 }
 0x21d   :  { %2730 = vmatpush3.msra.mxu1 %v1295_v25  ;;  %v1302_v46 = vand.u32 4294901760, %v1301_v61  ;;  %v1018_v61 = vld [vmem:[%s4898_s3] sm:$0x3] }
 0x21e   :  { %2731 = vmatprep.subr.mxu1 %v1414_v0  ;;  %v1421_v52 = vand.u32 4294901760, %v1420_v33  ;;  %v1309_v38 = vand.u32 4294901760, %v1308_v54  ;;  %v1032_v54 = vld [vmem:[%s4899_s4] sm:$0x3]  ;;  %v1027_v0 = vrot.slane %v1018_v61, %v3990_v7 }
 0x21f   :  { %2732 = vmatpush3.msra.mxu1 %v1302_v46  ;;  %v1041_v33 = vrot.slane %v1032_v54, %v3990_v7 }
 0x220   :  { %2733 = vmatprep.subr.mxu1 %v1421_v52 }
 0x221   :  { %2734 = vmatpush3.msra.mxu1 %v1309_v38  ;;  %v1037_v38 = vrot.slane %v1032_v54, %v3995_v27  ;;  %v5161_v54 = vld [vmem:[#allocation17_spill] sm:$0xff] }
 0x222   :  { %2773 = vmatprep.subr.mxu1 %v3999_v36 }
 0x288   :  { %v1013_v30 = vpop.xlane.xlu1 %1012 }
 0x289   :  { %v1014_v39 = vmul.f32 0.03125, %v1013_v30 }
 0x28b   :  { %v1015_v10 = vadd.f32 1e-05, %v1014_v39 }
 0x28c   :  { %v1001_v5 = vpop.xlane.xlu1 %1000 }
 0x28d   :  { %3201 = vrsqrt.f32 %v1015_v10  ;;  %v1002_v4 = vmul.f32 0.03125, %v1001_v5  ;;  %v1023_v10 = vrot.slane %v1018_v61, %v3995_v27 }
 0x28f   :  { %v1003_v25 = vadd.f32 1e-05, %v1002_v4 }
 0x291   :  { %3203 = vrsqrt.f32 %v1003_v25 }
 0x29a   :  { %v3202_v46 = vpop.eup %3201 }
 0x29b   :  { %v1017_v52 = vmul.f32 %v3202_v46, %v4011_v6  ;;  %v5162_v46 = vld [vmem:[#allocation24_spill] sm:$0xff] }
 0x29d   :  { %v1031_v5 = vmul.f32 %v1027_v0, %v1017_v52  ;;  %v5164_v52 = vld [vmem:[#allocation29_spill] sm:$0xff] }
 0x29e   :  { %v3204_v4 = vpop.eup %3203 }
 0x29f   :  { %v1045_v30 = vadd.f32 %v1041_v33, %v1031_v5  ;;  %v1005_v39 = vmul.f32 %v3204_v4, %v4016_v16  ;;  %v5163_v33 = vld [vmem:[#allocation18_spill] sm:$0xff]  ;;  %v5166_v5 = vld [vmem:[#allocation33_spill] sm:$0xff]  ;;  %v5167_v4 = vld [vmem:[#allocation20_spill] sm:$0xff] }
 0x2a1   :  { %v1047_v25 = vmax.f32 %v1045_v30, 0.0  ;;  %v1030_v60 = vmul.f32 %v1023_v10, %v1005_v39  ;;  %v5165_v10 = vld [vmem:[#allocation19_spill] sm:$0xff]  ;;  %v5169_v30 = vld [vmem:[#allocation22_spill] sm:$0xff] }
 0x2a2   :  { %v5170_v39 = vld [vmem:[#allocation23_spill] sm:$0xff] }
 0x2a3   :  { %v4348_v14 = vand.u32 4294901760, %v1047_v25  ;;  %v1044_v11 = vadd.f32 %v1037_v38, %v1030_v60  ;;  %v5168_v38 = vld [vmem:[#allocation21_spill] sm:$0xff] }
 0x2a5   :  { %1424 = vmatprep.mubr.f32.mxu1 %v4348_v14  ;;  %v1046_v50 = vmax.f32 %v1044_v11, 0.0  ;;  %v1184_v7 = vsub.f32 %v1047_v25, %v4348_v14  ;;  %v5171_v25 = vld [vmem:[#allocation28_spill] sm:$0xff] }
 0x2a7   :  { %v4352_v6 = vand.u32 4294901760, %v1046_v50  ;;  %v1185_v61 = vand.u32 4294901760, %v1184_v7 }
 0x2a9   :  { %v4355_v0 = vsub.f32 %v1046_v50, %v4352_v6  ;;  %1426 = vmatmul.mubr.f32.vlgmr.msra.gmra.mxu1 %v4352_v6  ;;  %v1186_v27 = vsub.f32 %v1184_v7, %v1185_v61 }
 0x2aa   :  { %2774 = vmatpush3.msra.mxu1 %v4020_v23  ;;  %1668 = vmatprep.mubr.f32.mxu1 %v1185_v61  ;;  %v5173_v61 = vld [vmem:[#allocation31_spill] sm:$0xff] }
 0x2ab   :  { %2775 = vmatprep.subr.mxu1 %v4024_v3  ;;  %v1187_v16 = vand.u32 4294901760, %v1186_v27  ;;  %v1191_v60 = vand.u32 4294901760, %v4355_v0  ;;  %v5174_v27 = vld [vmem:[#allocation25_spill] sm:$0xff] }
 0x2ac   :  { %2776 = vmatpush3.msra.mxu1 %v4029_v44 }
 0x2ad   :  { %2777 = vmatprep.subr.mxu1 %v4037_v8  ;;  %1188 = vmatprep.mubr.f32.mxu0 %v1187_v16  ;;  %v1192_v11 = vsub.f32 %v4355_v0, %v1191_v60  ;;  %v5175_v16 = vld [vmem:[#allocation26_spill] sm:$0xff] }
 0x2ae   :  { %2778 = vmatpush3.msra.mxu1 %v4044_v51 }
 0x2af   :  { %2779 = vmatprep.subr.mxu1 %v4051_v15  ;;  %v1193_v50 = vand.u32 4294901760, %v1192_v11  ;;  %v5176_v11 = vld [vmem:[#allocation34_spill] sm:$0xff] }
 0x2b0   :  { %2780 = vmatpush3.msra.mxu1 %v4061_v42 }
 0x2b1   :  { %2781 = vmatprep.subr.mxu1 %v4071_v55  ;;  %1194 = vmatmul.mubr.f32.vlgmr.msra.gmra.mxu0 %v1193_v50  ;;  %v5177_v50 = vld [vmem:[#allocation27_spill] sm:$0xff] }
 0x2b2   :  { %2739 = vmatpush3.msra.mxu0 %v4027_v43  ;;  %2782 = vmatpush3.msra.mxu1 %v4094_v24 }
 0x2b3   :  { %2740 = vmatprep.subr.mxu0 %v4035_v59  ;;  %1561 = vmatprep.mubr.f32.mxu0 %v1184_v7  ;;  %v5172_v7 = vld [vmem:[#allocation30_spill] sm:$0xff] }
 0x2b4   :  { %2783 = vmatprep.subr.mxu1 %v4100_v2  ;;  %2741 = vmatpush3.msra.mxu0 %v4042_v63 }
 0x2b5   :  { %2784 = vmatpush3.msra.mxu1 %v4108_v17  ;;  %2742 = vmatprep.subr.mxu0 %v4049_v20 }
 0x2b6   :  { %2785 = vmatprep.subr.mxu1 %v4117_v53  ;;  %2743 = vmatpush3.msra.mxu0 %v4059_v48 }
 0x2b7   :  { %2786 = vmatpush3.msra.mxu1 %v4124_v1  ;;  %2744 = vmatprep.subr.mxu0 %v4069_v49 }
 0x2b8   :  { %2787 = vmatprep.subr.mxu1 %v4131_v35  ;;  %2745 = vmatpush3.msra.mxu0 %v4079_v21 }
 0x2b9   :  { %2788 = vmatpush3.msra.mxu1 %v4141_v34  ;;  %2746 = vmatprep.subr.mxu0 %v4087_v47 }
 0x2ba   :  { %2789 = vmatprep.subr.mxu1 %v4151_v32  ;;  %2747 = vmatpush3.msra.mxu0 %v4106_v12 }
 0x2bb   :  { %2790 = vmatpush3.msra.mxu1 %v4174_v62  ;;  %2748 = vmatprep.subr.mxu0 %v4115_v13 }
 0x2bc   :  { %2791 = vmatprep.subr.mxu1 %v4180_v45  ;;  %2749 = vmatpush3.msra.mxu0 %v4122_v37 }
 0x2bd   :  { %2792 = vmatpush3.msra.mxu1 %v4188_v18  ;;  %2750 = vmatprep.subr.mxu0 %v4129_v9 }
 0x2be   :  { %2793 = vmatprep.subr.mxu1 %v4197_v58  ;;  %2751 = vmatpush3.msra.mxu0 %v4139_v40 }
 0x2bf   :  { %2794 = vmatpush3.msra.mxu1 %v4204_v19  ;;  %2752 = vmatprep.subr.mxu0 %v4149_v26 }
 0x2c0   :  { %2795 = vmatprep.subr.mxu1 %v4211_v41  ;;  %2753 = vmatpush3.msra.mxu0 %v5161_v54 }
 0x2c1   :  { %2796 = vmatpush3.msra.mxu1 %v5162_v46  ;;  %2754 = vmatprep.subr.mxu0 %v5163_v33 }
 0x2c2   :  { %2797 = vmatprep.subr.mxu1 %v5164_v52  ;;  %2755 = vmatpush3.msra.mxu0 %v5165_v10 }
 0x2c3   :  { %2798 = vmatpush3.msra.mxu1 %v5166_v5  ;;  %2756 = vmatprep.subr.mxu0 %v5167_v4 }
 0x2c4   :  { %2799 = vmatprep.subr.mxu1 %v4260_v22  ;;  %2757 = vmatpush3.msra.mxu0 %v5168_v38 }
 0x2c5   :  { %2800 = vmatpush3.msra.mxu1 %v4268_v28  ;;  %2758 = vmatprep.subr.mxu0 %v5169_v30 }
 0x2c6   :  { %2801 = vmatprep.subr.mxu1 %v4277_v29  ;;  %2759 = vmatpush3.msra.mxu0 %v5170_v39 }
 0x2c7   :  { %2802 = vmatpush3.msra.mxu1 %v4284_v31  ;;  %2760 = vmatprep.subr.mxu0 %v5171_v25 }
 0x2c8   :  { %2803 = vmatprep.subr.mxu1 %v4291_v56  ;;  %2761 = vmatpush3.msra.mxu0 %v5172_v7 }
 0x2c9   :  { %2804 = vmatpush3.msra.mxu1 %v4301_v57  ;;  %2762 = vmatprep.subr.mxu0 %v5173_v61 }
 0x2ca   :  { %1672 = vmatmul.mubr.f32.vlgmr.msra.gmra.mxu1 %v1191_v60  ;;  %2843 = vmatprep.subr.mxu1 %v3999_v36  ;;  %v5178_v60 = vld [vmem:[#allocation32_spill] sm:$0xff]  ;;  %v5179_v36 = vld [vmem:[#allocation35_spill] sm:$0xff] }
 0x2cb   :  { %2763 = vmatpush3.msra.mxu0 %v5174_v27  ;;  %2844 = vmatpush3.msra.mxu1 %v4020_v23  ;;  %v5180_v23 = vld [vmem:[#allocation36_spill] sm:$0xff] }
 0x2cc   :  { %1942 = vmatprep.mubr.f32.mxu1 %v4348_v14  ;;  %2764 = vmatprep.subr.mxu0 %v5175_v16 }
 0x2cd   :  { %2845 = vmatprep.subr.mxu1 %v4024_v3  ;;  %2765 = vmatpush3.msra.mxu0 %v5176_v11  ;;  %v5181_v3 = vld [vmem:[#allocation15_spill] sm:$0xff] }
 0x2ce   :  { %2846 = vmatpush3.msra.mxu1 %v4029_v44  ;;  %2766 = vmatprep.subr.mxu0 %v5177_v50  ;;  %v5182_v44 = vand.u32 4294901760, %v5181_v3 }
 0x2cf   :  { %2847 = vmatprep.subr.mxu1 %v4037_v8  ;;  %2767 = vmatpush3.msra.mxu0 %v5178_v60  ;;  %v5183_v8 = vand.u32 4294901760, %v4027_v43  ;;  %v5187_v43 = vand.u32 4294901760, %v4059_v48  ;;  %v5191_v48 = vand.u32 4294901760, %v4106_v12  ;;  %v5199_v12 = vand.u32 4294901760, %v5165_v10 }
 0x2d0   :  { %2848 = vmatpush3.msra.mxu1 %v4044_v51  ;;  %2768 = vmatprep.subr.mxu0 %v5179_v36  ;;  %v5184_v51 = vand.u32 4294901760, %v4035_v59  ;;  %v5188_v59 = vand.u32 4294901760, %v4069_v49  ;;  %v5192_v49 = vand.u32 4294901760, %v4115_v13  ;;  %v5202_v13 = vand.u32 4294901760, %v5169_v30 }
 0x2d1   :  { %2849 = vmatprep.subr.mxu1 %v4051_v15  ;;  %2769 = vmatpush3.msra.mxu0 %v5180_v23  ;;  %v5185_v15 = vand.u32 4294901760, %v4042_v63  ;;  %v5189_v63 = vand.u32 4294901760, %v4079_v21  ;;  %v5194_v21 = vand.u32 4294901760, %v4129_v9  ;;  %v5208_v9 = vand.u32 4294901760, %v5175_v16 }
 0x2d2   :  { %2850 = vmatpush3.msra.mxu1 %v4061_v42  ;;  %1564 = vmatmul.mubr.f32.vlgmr.msra.gmra.mxu0 %v4355_v0  ;;  %v5186_v42 = vand.u32 4294901760, %v4049_v20  ;;  %v5190_v20 = vand.u32 4294901760, %v4087_v47  ;;  %v5195_v47 = vand.u32 4294901760, %v4139_v40  ;;  %v5210_v40 = vand.u32 4294901760, %v5176_v11 }
 0x2d3   :  { %2808 = vmatprep.subr.mxu0 %v5182_v44  ;;  %2851 = vmatprep.subr.mxu1 %v4071_v55  ;;  %v5193_v55 = vand.u32 4294901760, %v4122_v37  ;;  %v5206_v37 = vand.u32 4294901760, %v5173_v61 }
 0x2d4   :  { %2809 = vmatpush3.msra.mxu0 %v5183_v8  ;;  %1838 = vmatprep.mubr.f32.mxu0 %v4348_v14  ;;  %v1960_v14 = vld [vmem:[#allocation8 + $0x58] sm:$0xff] }
 0x2d5   :  { %2852 = vmatpush3.msra.mxu1 %v4094_v24  ;;  %2810 = vmatprep.subr.mxu0 %v5184_v51  ;;  %v5196_v24 = vand.u32 4294901760, %v4149_v26  ;;  %v5212_v26 = vand.u32 4294901760, %v5178_v60 }
 0x2d6   :  { %2853 = vmatprep.subr.mxu1 %v4100_v2  ;;  %2811 = vmatpush3.msra.mxu0 %v5185_v15  ;;  %v5198_v2 = vand.u32 4294901760, %v5163_v33  ;;  %v1958_v33 = vld [vmem:[#allocation8 + $0x48] sm:$0xff] }
 0x2d7   :  { %2854 = vmatpush3.msra.mxu1 %v4108_v17  ;;  %2812 = vmatprep.subr.mxu0 %v5186_v42  ;;  %v5200_v17 = vand.u32 4294901760, %v5167_v4  ;;  %v4547_v4 = vand.u32 4294901760, %v1958_v33 }
 0x2d8   :  { %2855 = vmatprep.subr.mxu1 %v4117_v53  ;;  %2813 = vmatpush3.msra.mxu0 %v5187_v43  ;;  %v5203_v53 = vand.u32 4294901760, %v5170_v39 }
 0x2d9   :  { %2856 = vmatpush3.msra.mxu1 %v4124_v1  ;;  %2814 = vmatprep.subr.mxu0 %v5188_v59  ;;  %v5207_v1 = vand.u32 4294901760, %v5174_v27  ;;  %v4568_v27 = vsub.f32 %v1958_v33, %v4547_v4 }
 0x2da   :  { %2857 = vmatprep.subr.mxu1 %v4131_v35  ;;  %2815 = vmatpush3.msra.mxu0 %v5189_v63  ;;  %v5209_v35 = vmov 0.0   ;;  %v1957_v63 = vld [vmem:[#allocation8 + $0x40] sm:$0xff] }
 0x2db   :  { %2858 = vmatpush3.msra.mxu1 %v4141_v34  ;;  %2816 = vmatprep.subr.mxu0 %v5190_v20  ;;  %v5211_v34 = vand.u32 4294901760, %v5177_v50  ;;  %v5054_v15 = vand.u32 4294901760, %v4568_v27 }
 0x2dc   :  { %2859 = vmatprep.subr.mxu1 %v4151_v32  ;;  %2817 = vmatpush3.msra.mxu0 %v5191_v48  ;;  %v5213_v32 = vand.u32 4294901760, %v5179_v36 }
 0x2dd   :  { %2860 = vmatpush3.msra.mxu1 %v4174_v62  ;;  %2818 = vmatprep.subr.mxu0 %v5192_v49  ;;  %v5204_v62 = vand.u32 4294901760, %v5171_v25  ;;  %v2102_v48 = vsub.f32 %v4568_v27, %v5054_v15  ;;  %v4602_v49 = vand.u32 4294901760, %v1957_v63 }
 0x2de   :  { %2861 = vmatprep.subr.mxu1 %v4180_v45  ;;  %2819 = vmatpush3.msra.mxu0 %v5193_v55  ;;  %v5197_v45 = vand.u32 4294901760, %v5161_v54  ;;  %v1956_v55 = vld [vmem:[#allocation8 + $0x38] sm:$0xff] }
 0x2df   :  { %2862 = vmatpush3.msra.mxu1 %v4188_v18  ;;  %2820 = vmatprep.subr.mxu0 %v5194_v21  ;;  %v5214_v18 = vand.u32 4294901760, %v5180_v23 }
 0x2e0   :  { %2863 = vmatprep.subr.mxu1 %v4197_v58  ;;  %2821 = vmatpush3.msra.mxu0 %v5195_v47  ;;  %v1964_v58 = vld [vmem:[#allocation8 + $0x78] sm:$0xff]  ;;  %v4608_v47 = vsub.f32 %v1957_v63, %v4602_v49  ;;  %v1949_v63 = vld [vmem:[#allocation8] sm:$0xff] }
 0x2e1   :  { %2864 = vmatpush3.msra.mxu1 %v4204_v19  ;;  %2822 = vmatprep.subr.mxu0 %v5196_v24  ;;  %v4525_v19 = vand.u32 4294901760, %v1964_v58  ;;  %v4610_v24 = vand.u32 4294901760, %v1956_v55 }
 0x2e2   :  { %2865 = vmatprep.subr.mxu1 %v4211_v41  ;;  %2823 = vmatpush3.msra.mxu0 %v5197_v45  ;;  %v5201_v41 = vand.u32 4294901760, %v5168_v38  ;;  %v1955_v45 = vld [vmem:[#allocation8 + $0x30] sm:$0xff] }
 0x2e3   :  { %2866 = vmatpush3.msra.mxu1 %v5162_v46  ;;  %2824 = vmatprep.subr.mxu0 %v5198_v2  ;;  %v1959_v46 = vld [vmem:[#allocation8 + $0x50] sm:$0xff]  ;;  %v2103_v2 = vand.u32 4294901760, %v2102_v48 }
 0x2e4   :  { %2867 = vmatprep.subr.mxu1 %v5164_v52  ;;  %2825 = vmatpush3.msra.mxu0 %v5199_v12  ;;  %v5053_v12 = vand.u32 4294901760, %v4608_v47 }
 0x2e5   :  { %2868 = vmatpush3.msra.mxu1 %v5166_v5  ;;  %2826 = vmatprep.subr.mxu0 %v5200_v17  ;;  %v4545_v5 = vand.u32 4294901760, %v1959_v46  ;;  %v4617_v17 = vsub.f32 %v1956_v55, %v4610_v24 }
 0x2e6   :  { %2869 = vmatprep.subr.mxu1 %v4260_v22  ;;  %2827 = vmatpush3.msra.mxu0 %v5201_v41  ;;  %v5205_v22 = vand.u32 4294901760, %v5172_v7  ;;  %v4619_v41 = vand.u32 4294901760, %v1955_v45 }
 0x2e7   :  { %2870 = vmatpush3.msra.mxu1 %v4268_v28  ;;  %2828 = vmatprep.subr.mxu0 %v5202_v13  ;;  %v4528_v28 = vsub.f32 %v1964_v58, %v4525_v19  ;;  %v4564_v61 = vsub.f32 %v1959_v46, %v4545_v5  ;;  %v1954_v13 = vld [vmem:[#allocation8 + $0x28] sm:$0xff]  ;;  %v1951_v46 = vld [vmem:[#allocation8 + $0x10] sm:$0xff] }
 0x2e8   :  { %2871 = vmatprep.subr.mxu1 %v4277_v29  ;;  %2829 = vmatpush3.msra.mxu0 %v5203_v53  ;;  %v2109_v53 = vsub.f32 %v4608_v47, %v5053_v12 }
 0x2e9   :  { %2872 = vmatpush3.msra.mxu1 %v4284_v31  ;;  %2830 = vmatprep.subr.mxu0 %v5204_v62  ;;  %v1962_v31 = vld [vmem:[#allocation8 + $0x68] sm:$0xff]  ;;  %v2059_v52 = vand.u32 4294901760, %v4528_v28  ;;  %v2094_v23 = vand.u32 4294901760, %v4564_v61  ;;  %v5052_v62 = vand.u32 4294901760, %v4617_v17 }
 0x2ea   :  { %2873 = vmatprep.subr.mxu1 %v4291_v56  ;;  %2831 = vmatpush3.msra.mxu0 %v5205_v22  ;;  %v1963_v56 = vld [vmem:[#allocation8 + $0x70] sm:$0xff]  ;;  %v4533_v0 = vand.u32 4294901760, %v1962_v31  ;;  %v4629_v22 = vsub.f32 %v1955_v45, %v4619_v41 }
 0x2eb   :  { %2874 = vmatpush3.msra.mxu1 %v4301_v57  ;;  %2832 = vmatprep.subr.mxu0 %v5206_v37  ;;  %v4530_v29 = vand.u32 4294901760, %v1963_v56  ;;  %v1961_v57 = vld [vmem:[#allocation8 + $0x60] sm:$0xff]  ;;  %v2060_v25 = vsub.f32 %v4528_v28, %v2059_v52  ;;  %v2095_v59 = vsub.f32 %v4564_v61, %v2094_v23  ;;  %v4631_v37 = vand.u32 4294901760, %v1954_v13 }
 0x2ec   :  { %1944 = vmatmul.mubr.f32.vlgmr.msra.gmra.mxu1 %v4352_v6  ;;  %2833 = vmatpush3.msra.mxu0 %v5207_v1  ;;  %v4535_v54 = vand.u32 4294901760, %v1961_v57  ;;  %v4550_v38 = vsub.f32 %v1962_v31, %v4533_v0  ;;  %v1953_v1 = vld [vmem:[#allocation8 + $0x20] sm:$0xff] }
 0x2ed   :  { %2834 = vmatprep.subr.mxu0 %v5208_v9  ;;  %3015 = vmatprep.subr.mxu1 %v5209_v35  ;;  %v4542_v10 = vsub.f32 %v1963_v56, %v4530_v29  ;;  %v2061_v60 = vand.u32 4294901760, %v2060_v25  ;;  %v2096_v21 = vand.u32 4294901760, %v2095_v59  ;;  %v2110_v9 = vand.u32 4294901760, %v2109_v53 }
 0x2ee   :  { %2835 = vmatpush3.msra.mxu0 %v5210_v40  ;;  %v4553_v30 = vsub.f32 %v1961_v57, %v4535_v54  ;;  %v2073_v16 = vand.u32 4294901760, %v4550_v38  ;;  %v2116_v40 = vsub.f32 %v4617_v17, %v5052_v62  ;;  %3047 = vmatprep.mubr.msk.f32.mxu1 %vm3328_vm1, %v5209_v35 }
 0x2ef   :  { %2836 = vmatprep.subr.mxu0 %v5211_v34  ;;  %v2066_v7 = vand.u32 4294901760, %v4542_v10  ;;  %3016 = vmatpush3.msra.mxu1 %v2061_v60  ;;  %v5051_v34 = vand.u32 4294901760, %v4629_v22 }
 0x2f0   :  { %2837 = vmatpush3.msra.mxu0 %v5212_v26  ;;  %v2080_v11 = vand.u32 4294901760, %v4553_v30  ;;  %v2074_v3 = vsub.f32 %v4550_v38, %v2073_v16  ;;  %3017 = vmatprep.subr.mxu1 %v5209_v35  ;;  %v4641_v26 = vsub.f32 %v1954_v13, %v4631_v37  ;;  %v2117_v58 = vand.u32 4294901760, %v2116_v40 }
 0x2f1   :  { %2838 = vmatprep.subr.mxu0 %v5213_v32  ;;  %v2067_v36 = vsub.f32 %v4542_v10, %v2066_v7  ;;  %v4645_v32 = vand.u32 4294901760, %v1953_v1  ;;  %v2123_v56 = vsub.f32 %v4629_v22, %v5051_v34 }
 0x2f2   :  { %2839 = vmatpush3.msra.mxu0 %v5214_v18  ;;  %v2081_v44 = vsub.f32 %v4553_v30, %v2080_v11  ;;  %v2075_v42 = vand.u32 4294901760, %v2074_v3  ;;  %v1952_v18 = vld [vmem:[#allocation8 + $0x18] sm:$0xff]  ;;  %v5050_v31 = vand.u32 4294901760, %v4641_v26 }
 0x2f3   :  { %1840 = vmatmul.mubr.f32.vlgmr.msra.gmra.mxu0 %v4352_v6  ;;  %2980 = vmatprep.subr.mxu0 %v5209_v35  ;;  %v4537_v6 = vand.u32 4294901760, %v1960_v14  ;;  %v2068_v8 = vand.u32 4294901760, %v2067_v36  ;;  %v4652_v57 = vand.u32 4294901760, %v1952_v18  ;;  %v2124_v33 = vand.u32 4294901760, %v2123_v56 }
 0x2f4   :  { %2981 = vmatpush3.msra.mxu0 %v4525_v19  ;;  %v2082_v43 = vand.u32 4294901760, %v2081_v44  ;;  %v2130_v25 = vsub.f32 %v4641_v26, %v5050_v31  ;;  %v4665_v36 = vand.u32 4294901760, %v1951_v46  ;;  %v1950_v44 = vld [vmem:[#allocation8 + $0x8] sm:$0xff]  ;;  %3012 = vmatprep.mubr.msk.f32.mxu0 %vm3328_vm1, %v5209_v35 }
 0x2f5   :  { %2982 = vmatprep.subr.mxu0 %v5209_v35  ;;  %v4556_v39 = vsub.f32 %v1960_v14, %v4537_v6  ;;  %3018 = vmatpush3.msra.mxu1 %v2068_v8  ;;  %v4656_v14 = vsub.f32 %v1953_v1, %v4645_v32  ;;  %v4663_v60 = vsub.f32 %v1952_v18, %v4652_v57 }
 0x2f6   :  { %2983 = vmatpush3.msra.mxu0 %v4530_v29  ;;  %3019 = vmatprep.subr.mxu1 %v5209_v35  ;;  %v2131_v8 = vand.u32 4294901760, %v2130_v25 }
 0x2f7   :  { %2984 = vmatprep.subr.mxu0 %v5209_v35  ;;  %v2087_v50 = vand.u32 4294901760, %v4556_v39  ;;  %3020 = vmatpush3.msra.mxu1 %v2075_v42  ;;  %v5049_v3 = vand.u32 4294901760, %v4656_v14  ;;  %v4673_v42 = vsub.f32 %v1951_v46, %v4665_v36 }
 0x2f8   :  { %2985 = vmatpush3.msra.mxu0 %v4533_v0  ;;  %3021 = vmatprep.subr.mxu1 %v5209_v35 }
 0x2f9   :  { %2986 = vmatprep.subr.mxu0 %v5209_v35  ;;  %v2088_v51 = vsub.f32 %v4556_v39, %v2087_v50  ;;  %3022 = vmatpush3.msra.mxu1 %v2082_v43  ;;  %v4675_v43 = vand.u32 4294901760, %v1950_v44  ;;  %v2137_v59 = vsub.f32 %v4656_v14, %v5049_v3  ;;  %v5047_v48 = vand.u32 4294901760, %v4673_v42 }
 0x2fa   :  { %2987 = vmatpush3.msra.mxu0 %v4535_v54  ;;  %3023 = vmatprep.subr.mxu1 %v5209_v35 }
 0x2fb   :  { %2988 = vmatprep.subr.mxu0 %v5209_v35  ;;  %v2089_v20 = vand.u32 4294901760, %v2088_v51  ;;  %v5048_v51 = vand.u32 4294901760, %v4663_v60  ;;  %v4688_v55 = vsub.f32 %v1950_v44, %v4675_v43  ;;  %v2138_v45 = vand.u32 4294901760, %v2137_v59 }
 0x2fc   :  { %2989 = vmatpush3.msra.mxu0 %v4537_v6  ;;  %v2151_v13 = vsub.f32 %v4673_v42, %v5047_v48 }
 0x2fd   :  { %2990 = vmatprep.subr.mxu0 %v5209_v35  ;;  %3024 = vmatpush3.msra.mxu1 %v2089_v20  ;;  %v2144_v20 = vsub.f32 %v4663_v60, %v5048_v51  ;;  %v5046_v53 = vand.u32 4294901760, %v4688_v55 }
 0x2fe   :  { %2991 = vmatpush3.msra.mxu0 %v4545_v5  ;;  %3025 = vmatprep.subr.mxu1 %v5209_v35 }
 0x2ff   :  { %2992 = vmatprep.subr.mxu0 %v5209_v35  ;;  %3026 = vmatpush3.msra.mxu1 %v2096_v21  ;;  %v4690_v21 = vand.u32 4294901760, %v1949_v63  ;;  %v2158_v40 = vsub.f32 %v4688_v55, %v5046_v53 }
 0x300   :  { %2993 = vmatpush3.msra.mxu0 %v4547_v4  ;;  %3027 = vmatprep.subr.mxu1 %v5209_v35 }
 0x301   :  { %2994 = vmatprep.subr.mxu0 %v5209_v35  ;;  %3028 = vmatpush3.msra.mxu1 %v2103_v2  ;;  %v2145_v2 = vand.u32 4294901760, %v2144_v20  ;;  %v4700_v1 = vsub.f32 %v1949_v63, %v4690_v21  ;;  %v2665_v20 = vld [vmem:[%s4901_s6] ss:$0 sm:$0xff] }
 0x302   :  { %2995 = vmatpush3.msra.mxu0 %v4602_v49  ;;  %3029 = vmatprep.subr.mxu1 %v5209_v35 }
 0x303   :  { %2996 = vmatprep.subr.mxu0 %v5209_v35  ;;  %3030 = vmatpush3.msra.mxu1 %v2110_v9  ;;  %v2152_v9 = vand.u32 4294901760, %v2151_v13  ;;  %v5045_v18 = vand.u32 4294901760, %v4700_v1 }
 0x304   :  { %2997 = vmatpush3.msra.mxu0 %v4610_v24  ;;  %3031 = vmatprep.subr.mxu1 %v5209_v35 }
 0x305   :  { %2998 = vmatprep.subr.mxu0 %v5209_v35  ;;  %3032 = vmatpush3.msra.mxu1 %v2117_v58  ;;  %v2159_v58 = vand.u32 4294901760, %v2158_v40  ;;  %v2165_v56 = vsub.f32 %v4700_v1, %v5045_v18 }
 0x306   :  { %2999 = vmatpush3.msra.mxu0 %v4619_v41  ;;  %3033 = vmatprep.subr.mxu1 %v5209_v35 }
 0x307   :  { %3000 = vmatprep.subr.mxu0 %v5209_v35  ;;  %3034 = vmatpush3.msra.mxu1 %v2124_v33  ;;  %v2166_v46 = vand.u32 4294901760, %v2165_v56 }
 0x308   :  { %3001 = vmatpush3.msra.mxu0 %v4631_v37  ;;  %3035 = vmatprep.subr.mxu1 %v5209_v35 }
 0x309   :  { %3002 = vmatprep.subr.mxu0 %v5209_v35  ;;  %3036 = vmatpush3.msra.mxu1 %v2131_v8 }
 0x30a   :  { %3003 = vmatpush3.msra.mxu0 %v4645_v32  ;;  %3037 = vmatprep.subr.mxu1 %v5209_v35 }
 0x30b   :  { %3004 = vmatprep.subr.mxu0 %v5209_v35  ;;  %3038 = vmatpush3.msra.mxu1 %v2138_v45 }
 0x30c   :  { %3005 = vmatpush3.msra.mxu0 %v4652_v57  ;;  %3039 = vmatprep.subr.mxu1 %v5209_v35 }
 0x30d   :  { %3006 = vmatprep.subr.mxu0 %v5209_v35  ;;  %3040 = vmatpush3.msra.mxu1 %v2145_v2 }
 0x30e   :  { %3007 = vmatpush3.msra.mxu0 %v4665_v36  ;;  %3041 = vmatprep.subr.mxu1 %v5209_v35 }
 0x30f   :  { %3008 = vmatprep.subr.mxu0 %v5209_v35  ;;  %3042 = vmatpush3.msra.mxu1 %v2152_v9 }
 0x310   :  { %3009 = vmatpush3.msra.mxu0 %v4675_v43  ;;  %3043 = vmatprep.subr.mxu1 %v5209_v35 }
 0x311   :  { %3010 = vmatprep.subr.mxu0 %v5209_v35  ;;  %3044 = vmatpush3.msra.mxu1 %v2159_v58 }
 0x312   :  { %3011 = vmatpush3.msra.mxu0 %v4690_v21  ;;  %3045 = vmatprep.subr.mxu1 %v5209_v35 }
 0x313   :  { %3050 = vmatprep.subr.mxu0 %v5209_v35  ;;  %3046 = vmatpush3.msra.mxu1 %v2166_v46 }
 0x314   :  { %3085 = vmatprep.subr.mxu1 %v5209_v35 }
 0x369   :  { %v2735_v25 = vpop.f32.mrf.mxu1 }
 0x36b   :  { %v2736_v63 = vpop.f32.mrf.mxu1 }
 0x36c   :  { %v2737_v9 = vadd.f32 %v2736_v63, %v2735_v25 }
 0x371   :  { %v2700_v33 = vpop.f32.mrf.mxu0 }
 0x373   :  { %v2701_v44 = vpop.f32.mrf.mxu0 }
 0x374   :  { %v2702_v59 = vadd.f32 %v2701_v44, %v2700_v33 }
 0x376   :  { %v1196_v13 = vadd.f32 %v2702_v59, %v2665_v20 }
 0x378   :  { %v1428_v56 = vadd.f32 %v2737_v9, %v1196_v13 }
 0x38a   :  { %v2805_v45 = vpop.f32.mrf.mxu1 }
 0x38c   :  { %v2806_v58 = vpop.f32.mrf.mxu1 }
 0x38d   :  { %v2807_v48 = vadd.f32 %v2806_v58, %v2805_v45 }
 0x392   :  { %v2770_v8 = vpop.f32.mrf.mxu0 }
 0x394   :  { %v2771_v2 = vpop.f32.mrf.mxu0 }
 0x395   :  { %v2772_v40 = vadd.f32 %v2771_v2, %v2770_v8 }
 0x397   :  { %v1566_v18 = vadd.f32 %v2772_v40, %v1428_v56 }
 0x399   :  { %v1674_v31 = vadd.f32 %v2807_v48, %v1566_v18 }
 0x3ac   :  { %v2875_v46 = vpop.f32.mrf.mxu1 }
 0x3ae   :  { %v2876_v51 = vpop.f32.mrf.mxu1 }
 0x3af   :  { %v2877_v44 = vadd.f32 %v2876_v51, %v2875_v46 }
 0x3b3   :  { %v2840_v53 = vpop.f32.mrf.mxu0 }
 0x3b5   :  { %v2841_v3 = vpop.f32.mrf.mxu0 }
 0x3b6   :  { %v2842_v33 = vadd.f32 %v2841_v3, %v2840_v53  ;;  %v2666_v3 = vld [vmem:[%s4903_s8] ss:$0 sm:$0xff]  ;;  %s3291_s8 = scalar_lea.vmem %s2655_s22, 128 }
 0x3b7   :  { %p3292_p6 = scmp.ne.s32.totalorder %s2655_s22, %s3291_s8  ;;  %p3297_p8 = scmp.lt.s32.totalorder %s3291_s8, %s3291_s8 }
 0x3b8   :  { %v1842_v34 = vadd.f32 %v2842_v33, %v1674_v31 }
 0x3b9   :  { %p3298_p9 = por %p3297_p8, %p3296_p7 }
 0x3ba   :  { %v1946_v62 = vadd.f32 %v2877_v44, %v1842_v34 }
 0x3bb   :  { %p3299_p10 = pnand %p3298_p9, %p3292_p6 }
 0x3bc   :  { %v4724_v12 = vand.u32 4294901760, %v1946_v62 }
 0x3be   :  { %v4727_v15 = vsub.f32 %v1946_v62, %v4724_v12  ;;  %3048 = vmatmul.mubr.f32.vlgmr.msra.gmra.mxu1 %v4724_v12 }
 0x3bf   :  { %3086 = vmatpush3.msra.mxu1 %v4525_v19  ;;  %3117 = vmatprep.mubr.msk.f32.mxu1 %vm3328_vm1, %v5209_v35 }
 0x3c0   :  { %3087 = vmatprep.subr.mxu1 %v5209_v35  ;;  %v2048_v48 = vand.u32 4294901760, %v4727_v15 }
 0x3c1   :  { %3088 = vmatpush3.msra.mxu1 %v4530_v29 }
 0x3c2   :  { %3089 = vmatprep.subr.mxu1 %v5209_v35  ;;  %v2049_v34 = vsub.f32 %v4727_v15, %v2048_v48 }
 0x3c3   :  { %3090 = vmatpush3.msra.mxu1 %v4533_v0 }
 0x3c4   :  { %3091 = vmatprep.subr.mxu1 %v5209_v35  ;;  %v2050_v62 = vand.u32 4294901760, %v2049_v34 }
 0x3c5   :  { %3092 = vmatpush3.msra.mxu1 %v4535_v54 }
 0x3c6   :  { %3093 = vmatprep.subr.mxu1 %v5209_v35  ;;  %3013 = vmatmul.mubr.f32.vlgmr.msra.gmra.mxu0 %v2050_v62 }
 0x3c7   :  { %3051 = vmatpush3.msra.mxu0 %v4528_v28  ;;  %3094 = vmatpush3.msra.mxu1 %v4537_v6  ;;  %v5216_v28 = vand.u32 4294901760, %v4608_v47 }
 0x3c8   :  { %3052 = vmatprep.subr.mxu0 %v5209_v35  ;;  %3095 = vmatprep.subr.mxu1 %v5209_v35 }
 0x3c9   :  { %3053 = vmatpush3.msra.mxu0 %v4542_v10  ;;  %3096 = vmatpush3.msra.mxu1 %v4545_v5  ;;  %v5222_v10 = vand.u32 4294901760, %v4673_v42 }
 0x3ca   :  { %3054 = vmatprep.subr.mxu0 %v5209_v35  ;;  %3097 = vmatprep.subr.mxu1 %v5209_v35 }
 0x3cb   :  { %3055 = vmatpush3.msra.mxu0 %v4550_v38  ;;  %3098 = vmatpush3.msra.mxu1 %v4547_v4 }
 0x3cc   :  { %3056 = vmatprep.subr.mxu0 %v5209_v35  ;;  %3099 = vmatprep.subr.mxu1 %v5209_v35 }
 0x3cd   :  { %3057 = vmatpush3.msra.mxu0 %v4553_v30  ;;  %3100 = vmatpush3.msra.mxu1 %v4602_v49 }
 0x3ce   :  { %3058 = vmatprep.subr.mxu0 %v5209_v35  ;;  %3101 = vmatprep.subr.mxu1 %v5209_v35 }
 0x3cf   :  { %3059 = vmatpush3.msra.mxu0 %v4556_v39  ;;  %3102 = vmatpush3.msra.mxu1 %v4610_v24 }
 0x3d0   :  { %3060 = vmatprep.subr.mxu0 %v5209_v35  ;;  %3103 = vmatprep.subr.mxu1 %v5209_v35 }
 0x3d1   :  { %3061 = vmatpush3.msra.mxu0 %v4564_v61  ;;  %3104 = vmatpush3.msra.mxu1 %v4619_v41 }
 0x3d2   :  { %3062 = vmatprep.subr.mxu0 %v5209_v35  ;;  %3105 = vmatprep.subr.mxu1 %v5209_v35 }
 0x3d3   :  { %3063 = vmatpush3.msra.mxu0 %v4568_v27  ;;  %3106 = vmatpush3.msra.mxu1 %v4631_v37 }
 0x3d4   :  { %3064 = vmatprep.subr.mxu0 %v5209_v35  ;;  %3107 = vmatprep.subr.mxu1 %v5209_v35 }
 0x3d5   :  { %3065 = vmatpush3.msra.mxu0 %v4608_v47  ;;  %3108 = vmatpush3.msra.mxu1 %v4645_v32 }
 0x3d6   :  { %3066 = vmatprep.subr.mxu0 %v5209_v35  ;;  %3109 = vmatprep.subr.mxu1 %v5209_v35 }
 0x3d7   :  { %3067 = vmatpush3.msra.mxu0 %v4617_v17  ;;  %3110 = vmatpush3.msra.mxu1 %v4652_v57 }
 0x3d8   :  { %3068 = vmatprep.subr.mxu0 %v5209_v35  ;;  %3111 = vmatprep.subr.mxu1 %v5209_v35 }
 0x3d9   :  { %3069 = vmatpush3.msra.mxu0 %v4629_v22  ;;  %3112 = vmatpush3.msra.mxu1 %v4665_v36 }
 0x3da   :  { %3070 = vmatprep.subr.mxu0 %v5209_v35  ;;  %3113 = vmatprep.subr.mxu1 %v5209_v35 }
 0x3db   :  { %3071 = vmatpush3.msra.mxu0 %v4641_v26  ;;  %3114 = vmatpush3.msra.mxu1 %v4675_v43 }
 0x3dc   :  { %3072 = vmatprep.subr.mxu0 %v5209_v35  ;;  %3115 = vmatprep.subr.mxu1 %v5209_v35 }
 0x3dd   :  { %3073 = vmatpush3.msra.mxu0 %v4656_v14  ;;  %3116 = vmatpush3.msra.mxu1 %v4690_v21 }
 0x3de   :  { %3074 = vmatprep.subr.mxu0 %v5209_v35  ;;  %3118 = vmatmul.mubr.f32.vlgmr.msra.gmra.mxu1 %v2048_v48 }
 0x3df   :  { %3155 = vmatprep.subr.mxu1 %v5209_v35  ;;  %3075 = vmatpush3.msra.mxu0 %v4663_v60 }
 0x3e0   :  { %3156 = vmatpush3.msra.mxu1 %v4525_v19  ;;  %3076 = vmatprep.subr.mxu0 %v5209_v35  ;;  %v5215_v19 = vand.u32 4294901760, %v4568_v27 }
 0x3e1   :  { %3157 = vmatprep.subr.mxu1 %v5209_v35  ;;  %3077 = vmatpush3.msra.mxu0 %v4673_v42  ;;  %v2667_v42 = vld [vmem:[%s4904_s9] ss:$0 sm:$0xff] }
 0x3e2   :  { %3158 = vmatpush3.msra.mxu1 %v4530_v29  ;;  %3078 = vmatprep.subr.mxu0 %v5209_v35  ;;  %v5217_v29 = vand.u32 4294901760, %v4617_v17 }
 0x3e3   :  { %3159 = vmatprep.subr.mxu1 %v5209_v35  ;;  %3079 = vmatpush3.msra.mxu0 %v4688_v55 }
 0x3e4   :  { %3160 = vmatpush3.msra.mxu1 %v4533_v0  ;;  %3080 = vmatprep.subr.mxu0 %v5209_v35  ;;  %v5218_v0 = vand.u32 4294901760, %v4629_v22 }
 0x3e5   :  { %3161 = vmatprep.subr.mxu1 %v5209_v35  ;;  %3081 = vmatpush3.msra.mxu0 %v4700_v1 }
 0x3e6   :  { %3082 = vmatprep.mubr.msk.f32.mxu0 %vm3328_vm1, %v5209_v35  ;;  %3162 = vmatpush3.msra.mxu1 %v4535_v54  ;;  %v5219_v54 = vand.u32 4294901760, %v4641_v26  ;;  %v5225_v26 = vld [vmem:[#allocation16_spill] sm:$0xff] }
 0x3e7   :  { %3083 = vmatmul.mubr.f32.vlgmr.msra.gmra.mxu0 %v4727_v15  ;;  %3120 = vmatprep.subr.mxu0 %v5209_v35  ;;  %vm2606_vm2 = vcmp.lt.s32.totalorder %v5225_v26, 16 }
 0x3e8   :  { %3163 = vmatprep.subr.mxu1 %v5209_v35  ;;  %3121 = vmatpush3.msra.mxu0 %v2059_v52  ;;  %v5221_v52 = vand.u32 4294901760, %v4663_v60 }
 0x3e9   :  { %3164 = vmatpush3.msra.mxu1 %v4537_v6  ;;  %3122 = vmatprep.subr.mxu0 %v5209_v35  ;;  %v5220_v6 = vand.u32 4294901760, %v4656_v14 }
 0x3ea   :  { %3165 = vmatprep.subr.mxu1 %v5209_v35  ;;  %3123 = vmatpush3.msra.mxu0 %v2066_v7 }
 0x3eb   :  { %3166 = vmatpush3.msra.mxu1 %v4545_v5  ;;  %3124 = vmatprep.subr.mxu0 %v5209_v35  ;;  %v5223_v5 = vand.u32 4294901760, %v4688_v55 }
 0x3ec   :  { %3167 = vmatprep.subr.mxu1 %v5209_v35  ;;  %3125 = vmatpush3.msra.mxu0 %v2073_v16 }
 0x3ed   :  { %3168 = vmatpush3.msra.mxu1 %v4547_v4  ;;  %3126 = vmatprep.subr.mxu0 %v5209_v35  ;;  %v5224_v4 = vand.u32 4294901760, %v4700_v1 }
 0x3ee   :  { %3169 = vmatprep.subr.mxu1 %v5209_v35  ;;  %3127 = vmatpush3.msra.mxu0 %v2080_v11 }
 0x3ef   :  { %3170 = vmatpush3.msra.mxu1 %v4602_v49  ;;  %3128 = vmatprep.subr.mxu0 %v5209_v35 }
 0x3f0   :  { %3171 = vmatprep.subr.mxu1 %v5209_v35  ;;  %3129 = vmatpush3.msra.mxu0 %v2087_v50 }
 0x3f1   :  { %3172 = vmatpush3.msra.mxu1 %v4610_v24  ;;  %3130 = vmatprep.subr.mxu0 %v5209_v35 }
 0x3f2   :  { %3173 = vmatprep.subr.mxu1 %v5209_v35  ;;  %3131 = vmatpush3.msra.mxu0 %v2094_v23 }
 0x3f3   :  { %3174 = vmatpush3.msra.mxu1 %v4619_v41  ;;  %3132 = vmatprep.subr.mxu0 %v5209_v35 }
 0x3f4   :  { %3175 = vmatprep.subr.mxu1 %v5209_v35  ;;  %3133 = vmatpush3.msra.mxu0 %v5215_v19 }
 0x3f5   :  { %3176 = vmatpush3.msra.mxu1 %v4631_v37  ;;  %3134 = vmatprep.subr.mxu0 %v5209_v35 }
 0x3f6   :  { %3177 = vmatprep.subr.mxu1 %v5209_v35  ;;  %3135 = vmatpush3.msra.mxu0 %v5216_v28 }
 0x3f7   :  { %3178 = vmatpush3.msra.mxu1 %v4645_v32  ;;  %3136 = vmatprep.subr.mxu0 %v5209_v35 }
 0x3f8   :  { %3179 = vmatprep.subr.mxu1 %v5209_v35  ;;  %3137 = vmatpush3.msra.mxu0 %v5217_v29 }
 0x3f9   :  { %3180 = vmatpush3.msra.mxu1 %v4652_v57  ;;  %3138 = vmatprep.subr.mxu0 %v5209_v35 }
 0x3fa   :  { %3181 = vmatprep.subr.mxu1 %v5209_v35  ;;  %3139 = vmatpush3.msra.mxu0 %v5218_v0 }
 0x3fb   :  { %3182 = vmatpush3.msra.mxu1 %v4665_v36  ;;  %3140 = vmatprep.subr.mxu0 %v5209_v35 }
 0x3fc   :  { %3183 = vmatprep.subr.mxu1 %v5209_v35  ;;  %3141 = vmatpush3.msra.mxu0 %v5219_v54 }
 0x3fd   :  { %3184 = vmatpush3.msra.mxu1 %v4675_v43  ;;  %3142 = vmatprep.subr.mxu0 %v5209_v35 }
 0x3fe   :  { %3185 = vmatprep.subr.mxu1 %v5209_v35  ;;  %3143 = vmatpush3.msra.mxu0 %v5220_v6 }
 0x3ff   :  { %3186 = vmatpush3.msra.mxu1 %v4690_v21  ;;  %3187 = vmatprep.mubr.msk.f32.mxu1 %vm3328_vm1, %v5209_v35 }
 0x400   :  { %3144 = vmatprep.subr.mxu0 %v5209_v35  ;;  %3188 = vmatmul.mubr.f32.vlgmr.msra.gmra.mxu1 %v4724_v12 }
 0x401   :  { %3145 = vmatpush3.msra.mxu0 %v5221_v52  ;;  %3152 = vmatprep.mubr.msk.f32.mxu0 %vm3328_vm1, %v5209_v35 }
 0x402   :  { %3146 = vmatprep.subr.mxu0 %v5209_v35 }
 0x403   :  { %3147 = vmatpush3.msra.mxu0 %v5222_v10 }
 0x404   :  { %3148 = vmatprep.subr.mxu0 %v5209_v35 }
 0x405   :  { %3149 = vmatpush3.msra.mxu0 %v5223_v5 }
 0x406   :  { %3150 = vmatprep.subr.mxu0 %v5209_v35 }
 0x407   :  { %3151 = vmatpush3.msra.mxu0 %v5224_v4 }
 0x408   :  { %3153 = vmatmul.mubr.f32.vlgmr.msra.gmra.mxu0 %v4724_v12 }
 0x47e   :  { %v2203_v38 = vpop.f32.mrf.mxu1 }
 0x480   :  { %v3049_v30 = vpop.f32.mrf.mxu1 }
 0x486   :  { %v2052_v39 = vpop.f32.mrf.mxu0 }
 0x487   :  { %v2204_v23 = vadd.f32 %v2203_v38, %v2052_v39 }
 0x488   :  { %v3014_v7 = vpop.f32.mrf.mxu0 }
 0x49e   :  { %v2396_v61 = vpop.f32.mrf.mxu1 }
 0x4a0   :  { %v3119_v27 = vpop.f32.mrf.mxu1 }
 0x4a7   :  { %v2307_v16 = vpop.f32.mrf.mxu0 }
 0x4a8   :  { %v2308_v49 = vadd.f32 %v2307_v16, %v2204_v23 }
 0x4a9   :  { %v3084_v11 = vpop.f32.mrf.mxu0 }
 0x4aa   :  { %v2397_v47 = vadd.f32 %v2396_v61, %v2308_v49 }
 0x4c0   :  { %v2602_v50 = vpop.f32.mrf.mxu1 }
 0x4c2   :  { %v3189_v15 = vpop.f32.mrf.mxu1 }
 0x4c8   :  { %v2515_v24 = vpop.f32.mrf.mxu0 }
 0x4c9   :  { %v2516_v35 = vadd.f32 %v2515_v24, %v2397_v47 }
 0x4ca   :  { %v3154_v17 = vpop.f32.mrf.mxu0 }
 0x4cb   :  { %v2603_v41 = vadd.f32 %v2602_v50, %v2516_v35 }
 0x4cd   :  { %2607 = vadd.xlane.f32.xlu0 %v2603_v41 }
 0x556   :  { %v2608_v22 = vpop.xlane.xlu0 %2607 }
 0x557   :  { %v2609_v12 = vmul.f32 0.0625, %v2608_v22 }
 0x559   :  { %v2610_v37 = vsub.f32 %v2603_v41, %v2609_v12 }
 0x55b   :  { %v2611_v32 = vmul.f32 %v2610_v37, %v2610_v37 }
 0x55d   :  { %v2614_v31 = vsel %vm2606_vm2, %v2611_v32, 0.0 }
 0x55e   :  { %2615 = vadd.xlane.f32.xlu1 %v2614_v31 }
 0x5e7   :  { %v2616_v57 = vpop.xlane.xlu1 %2615 }
 0x5e8   :  { %v2617_v14 = vmul.f32 0.0625, %v2616_v57 }
 0x5ea   :  { %v2618_v60 = vadd.f32 1e-05, %v2617_v14 }
 0x5ec   :  { %3205 = vrsqrt.f32 %v2618_v60 }
 0x5f9   :  { %v3206_v36 = vpop.eup %3205 }
 0x5fa   :  { %v2620_v51 = vmul.f32 %v3206_v36, %v2610_v37 }
 0x5fc   :  { %v2628_v43 = vmul.f32 %v2666_v3, %v2620_v51 }
 0x5fe   :  { %v2636_v55 = vadd.f32 %v2667_v42, %v2628_v43 }
 0x600   :  { %v2637_v21 = vsel %vm2606_vm2, %v2636_v55, -1e+30 }
 0x601   :  { %2638 = vmax.xlane.f32.xlu0 %v2637_v21 }
 0x68a   :  { %v2639_v53 = vpop.xlane.xlu0 %2638 }
 0x68b   :  { %v2640_v1 = vsub.f32 %v2637_v21, %v2639_v53 }
 0x68d   :  { %v2641_v18 = vmul.f32 1.442695, %v2640_v1 }
 0x68f   :  { %3207 = vpow2.f32 %v2641_v18 }
 0x69c   :  { %v3208_v25 = vpop.eup %3207 }
 0x69d   :  { %2643 = vadd.xlane.f32.xlu1 %v3208_v25 }
 0x726   :  { %v2644_v8 = vpop.xlane.xlu1 %2643 }
 0x727   :  { %3209 = vrcp.f32 %v2644_v8 }
 0x734   :  { %v3210_v59 = vpop.eup %3209 }
 0x735   :  { %v2646_v63 = vmul.f32 %v3210_v59, %v3208_v25 }
 0x737   :  { %2647 = vst [vmem:[#allocation10] sm:$0xff] %v2646_v63 }
 0x738   :  { %3302 = shalt.err (!%p3299_p10)
}
 0x739   :  { %2657 = dma.vmem_to_hbm [thread:$0]  %s2655_s22, 128, %s4905_s10, [#allocation4]  }
 0x73a   :  { %3317 = dma.done.wait [#allocation4], 128  }
 0x73b   :  { %3318 = vsyncadd [#allocation4], 4294967168 }
 0x73c   :  { %2661 = vsyncpa [#allocation3], 1 }
 0x73d   :  { %2662 = vsyncpa [#allocation6], 1 }
 0x73e   :  { %2663 = vsyncpa [#allocation9], 1 }
 0x73f   :  { %2664 = vsyncpa [#allocation4], 1 }

</bundles_post_ra>
